<compile_context>
chip_gen: v6e
topology: v6e:2x2x1
jax: 0.10.0
libtpu: 0.0.40
codegen_flags: <defaults>
</compile_context>

<pallas_src>
import functools

import jax
import jax.numpy as jnp
from jax.experimental import pallas as pl
from jax.experimental.pallas import tpu as pltpu


# -----------------------------------------------------------------------------
# Helpers
# -----------------------------------------------------------------------------
def _round_up(x, m):
    return ((x + m - 1) // m) * m


def _pad2d(a, rows, cols):
    return jnp.pad(a, ((0, rows - a.shape[0]), (0, cols - a.shape[1])))


# -----------------------------------------------------------------------------
# Layer planning: tile sizes, x residency, VMEM budget
# -----------------------------------------------------------------------------
# 48 MiB: comfortably above the scoped defaults (16 MiB v5e / 32 MiB v6e,v7x) while
# leaving headroom under v7x's 64 MiB physical VMEM.
# TODO(synk): per-generation tuning (v6e could use 64-96 MiB and tm=tk=1024) needs a
# trace-time pltpu.get_tpu_info() gate; kept at the portable budget here.
_VMEM_BUDGET = 48 * 1024 * 1024


def _vmem_estimate(npad, cpad, hpad, tm, tk, x_resident, out_itemsize):
    adj_bytes = 2 * tm * tk * 1                                   # int8 adj tiles, double-buffered
    x_bytes = 2 * (npad * cpad if x_resident else tk * cpad) * 2  # bf16
    w_bytes = 2 * (cpad * hpad + hpad * hpad) * 2 + 2 * 2 * hpad * 4
    out_bytes = 2 * tm * hpad * out_itemsize
    acc_bytes = tm * cpad * 4
    return adj_bytes + x_bytes + w_bytes + out_bytes + acc_bytes


def _plan_layer(npad, cpad, hpad, out_itemsize):
    """Pick (tm, tk, x_resident) under the VMEM budget. npad is a multiple of 512."""
    tk = 512
    tm = 512
    # v7x: the row-tile axis is what shards across the 2 TensorCores; for small grids keep
    # the row-block count even to avoid a 2:1 load imbalance (no effect on 1-TC v5e/v6e
    # beyond ~0.35us/step of extra grid overhead).
    if (npad // tm) % 2 == 1 and (npad // tm) < 8:
        for cand in (256, 128):
            if (npad // cand) % 2 == 0:
                tm = cand
                break
    x_resident = True
    if _vmem_estimate(npad, cpad, hpad, tm, tk, True, out_itemsize) > _VMEM_BUDGET:
        x_resident = False          # very large graph: stream x per reduction tile instead
    while (_vmem_estimate(npad, cpad, hpad, tm, tk, x_resident, out_itemsize) > _VMEM_BUDGET
           and tm > 128):
        tm //= 2                    # wide-feature fallback (matters on v7x's 64 MiB VMEM)
    return tm, tk, x_resident


# -----------------------------------------------------------------------------
# Pallas kernel: one fused GINConv layer (tiled K-reduction + fused MLP epilogue)
# -----------------------------------------------------------------------------
def gin_conv_kernel(adj_ref, x_ref, w1_ref, b1_ref, w2_ref, b2_ref,
                    out_ref, acc_ref, *, tk, x_resident, apply_relu):
    k = pl.program_id(1)

    # Self term is folded into the adjacency diagonal, so the accumulator starts at zero.
    @pl.when(k == 0)
    def _():
        acc_ref[...] = jnp.zeros_like(acc_ref)

    if x_resident:
        # x is a single resident [Npad, Cpad] VMEM block; slice the current reduction tile.
        start = pl.multiple_of(k * tk, tk)
        xk = x_ref[pl.ds(start, tk), :]
    else:
        xk = x_ref[...]

    # Aggregation (+ self term): adj tile [TM, TK] int8 -> bf16, @ x tile [TK, C], f32 acc.
    adj_bf16 = adj_ref[...].astype(jnp.float32).astype(jnp.bfloat16)
    acc_ref[...] += jnp.dot(adj_bf16, xk, preferred_element_type=jnp.float32)

    # Fused MLP epilogue on the last reduction step (rides in MXU/DMA slack while the next
    # row-block's adj tiles stream in).
    @pl.when(k == pl.num_programs(1) - 1)
    def _():
        h = acc_ref[...].astype(jnp.bfloat16)
        h1 = jnp.dot(h, w1_ref[...], preferred_element_type=jnp.float32) + b1_ref[...]
        h1 = jnp.maximum(h1, 0.0)
        out = jnp.dot(h1.astype(jnp.bfloat16), w2_ref[...],
                      preferred_element_type=jnp.float32) + b2_ref[...]
        if apply_relu:
            out = jnp.maximum(out, 0.0)
        out_ref[...] = out.astype(out_ref.dtype)


def gin_conv_layer(adj, x, w1, b1, w2, b2, *, apply_relu=True, out_dtype=jnp.bfloat16):
    """One fused GINConv layer. Inputs already padded: adj [Npad,Npad] int8 (incl. self term),
    x [Npad,Cpad] bf16, w1 [Cpad,Hpad] bf16, w2 [Hpad,Hpad] bf16, b [1,Hpad] f32."""
    npad, cpad = x.shape
    hpad = w2.shape[1]
    out_itemsize = jnp.dtype(out_dtype).itemsize
    tm, tk, x_resident = _plan_layer(npad, cpad, hpad, out_itemsize)
    grid = (npad // tm, npad // tk)

    kernel = functools.partial(gin_conv_kernel, tk=tk, x_resident=x_resident,
                               apply_relu=apply_relu)

    if x_resident:
        x_spec = pl.BlockSpec((npad, cpad), lambda i, k: (0, 0))   # resident, DMAed once
    else:
        x_spec = pl.BlockSpec((tk, cpad), lambda i, k: (k, 0))     # streamed per k tile

    # Honest traffic estimate: adj once, x once (resident) or once per row block, weights
    # and biases once, output once.
    x_reads = 1 if x_resident else grid[0]
    bytes_accessed = (int(adj.size) * adj.dtype.itemsize
                      + x_reads * int(x.size) * x.dtype.itemsize
                      + sum(int(a.size) * a.dtype.itemsize for a in (w1, b1, w2, b2))
                      + npad * hpad * out_itemsize)
    flops = 2 * npad * npad * cpad + 2 * npad * cpad * hpad + 2 * npad * hpad * hpad

    return pl.pallas_call(
        kernel,
        out_shape=jax.ShapeDtypeStruct((npad, hpad), out_dtype),
        grid_spec=pltpu.PrefetchScalarGridSpec(
            num_scalar_prefetch=0,
            grid=grid,
            in_specs=[
                # TODO(synk): pipeline_mode=pl.Buffered(3) on the adj spec would hide the
                # fused-epilogue bubble; left at default 2-deep buffering for portability.
                pl.BlockSpec((tm, tk), lambda i, k: (i, k)),        # adj tile, int8
                x_spec,                                             # x (resident or streamed)
                pl.BlockSpec((cpad, hpad), lambda i, k: (0, 0)),    # W1 (resident)
                pl.BlockSpec((1, hpad), lambda i, k: (0, 0)),       # b1 (resident)
                pl.BlockSpec((hpad, hpad), lambda i, k: (0, 0)),    # W2 (resident)
                pl.BlockSpec((1, hpad), lambda i, k: (0, 0)),       # b2 (resident)
            ],
            out_specs=pl.BlockSpec((tm, hpad), lambda i, k: (i, 0)),
            scratch_shapes=[pltpu.VMEM((tm, cpad), jnp.float32)],
        ),
        compiler_params=pltpu.CompilerParams(
            dimension_semantics=("parallel", "arbitrary"),
            vmem_limit_bytes=_VMEM_BUDGET,
        ),
        cost_estimate=pl.CostEstimate(flops=flops, transcendentals=0,
                                      bytes_accessed=bytes_accessed),
    )(adj, x, w1, b1, w2, b2)


# -----------------------------------------------------------------------------
# Parameter construction (deterministic, in-script)
# -----------------------------------------------------------------------------
def init_linear(key, in_dim, out_dim):
    """Kaiming-uniform-ish deterministic init; weight stored as [in, out]."""
    kw, kb = jax.random.split(key)
    bound = 1.0 / jnp.sqrt(jnp.float32(in_dim))
    w = jax.random.uniform(kw, (in_dim, out_dim), jnp.float32, -bound, bound)
    b = jax.random.uniform(kb, (1, out_dim), jnp.float32, -bound, bound)
    return w, b


def init_gin_params(key, in_channels, hid_channels, num_unit):
    """Params for num_unit + 1 GINConv layers (each = Linear, ReLU, Linear)."""
    params = []
    dims = [(in_channels, hid_channels)] + [(hid_channels, hid_channels)] * num_unit
    for (cin, chid) in dims:
        key, k1, k2 = jax.random.split(key, 3)
        w1, b1 = init_linear(k1, cin, chid)
        w2, b2 = init_linear(k2, chid, chid)
        params.append((w1, b1, w2, b2))
    return params


def pad_params(params, cpad, hpad):
    padded = []
    for idx, (w1, b1, w2, b2) in enumerate(params):
        cin = cpad if idx == 0 else hpad
        padded.append((
            _pad2d(w1, cin, hpad).astype(jnp.bfloat16),
            _pad2d(b1, 1, hpad),                          # bias stays f32
            _pad2d(w2, hpad, hpad).astype(jnp.bfloat16),
            _pad2d(b2, 1, hpad),
        ))
    return padded


# -----------------------------------------------------------------------------
# Full GIN forward (glue in plain JAX, hot path in Pallas)
# -----------------------------------------------------------------------------
def gin_forward(params, x, edge_index, *args, eps=0.0):
    """Mirrors GIN.forward: relu after every conv except the last.
    dropout / dropedge = 0.0 and batch_norm = False -> no-ops.
    Returns (x, args[1]) like the PyTorch module."""
    n, c = x.shape
    hid = params[0][2].shape[1]

    # Dense adjacency: adj[dst, src] += 1 (messages flow src -> dst, summed), with the GIN
    # self term (1 + eps) folded into the diagonal so the kernel needs no separate xi input.
    src, dst = edge_index[0], edge_index[1]
    adj = jnp.zeros((n, n), jnp.float32).at[dst, src].add(1.0)
    adj = adj + (1.0 + eps) * jnp.eye(n, dtype=jnp.float32)

    # Pad nodes to a multiple of 512 (always 512-wide reduction tiles) and features/hidden
    # to 128 lanes.
    npad = _round_up(max(n, 8), 512)
    cpad = _round_up(c, 128)
    hpad = _round_up(hid, 128)

    # TODO(synk): int8 is exact only for integer entries <= 127; for non-integer (1+eps) or
    # heavier multi-edge counts keep the adjacency in bf16 instead.
    adj_p = _pad2d(adj, npad, npad).astype(jnp.int8)
    h = _pad2d(x, npad, cpad).astype(jnp.bfloat16)
    padded_params = pad_params(params, cpad, hpad)

    for (w1, b1, w2, b2) in padded_params[:-1]:
        h = gin_conv_layer(adj_p, h, w1, b1, w2, b2, apply_relu=True,
                           out_dtype=jnp.bfloat16)
        # TODO(synk): BatchNorm / dropout omitted (batch_norm=False, dropout=0.0 defaults)
    w1, b1, w2, b2 = padded_params[-1]
    h = gin_conv_layer(adj_p, h, w1, b1, w2, b2, apply_relu=False,
                       out_dtype=jnp.float32)
    return h[:n, :hid], args[1]


# -----------------------------------------------------------------------------
# Pure-JAX reference mirroring the kernel's bf16 cast points (correctness check)
# -----------------------------------------------------------------------------
def gin_reference(params, x, edge_index, n, c, hid, eps=0.0):
    src, dst = edge_index[0], edge_index[1]
    adj = jnp.zeros((n, n), jnp.float32).at[dst, src].add(1.0)
    adj = adj + (1.0 + eps) * jnp.eye(n, dtype=jnp.float32)

    npad = _round_up(max(n, 8), 512)
    cpad = _round_up(c, 128)
    hpad = _round_up(hid, 128)

    a = _pad2d(adj, npad, npad)                    # integer counts, exact in f32 / int8 / bf16
    h = _pad2d(x, npad, cpad).astype(jnp.bfloat16)
    padded_params = pad_params(params, cpad, hpad)

    for li, (w1, b1, w2, b2) in enumerate(padded_params):
        z = a @ h.astype(jnp.float32)                               # (A + (1+eps)I) @ h
        zb = z.astype(jnp.bfloat16).astype(jnp.float32)
        h1 = jnp.maximum(zb @ w1.astype(jnp.float32) + b1, 0.0)
        h1b = h1.astype(jnp.bfloat16).astype(jnp.float32)
        out = h1b @ w2.astype(jnp.float32) + b2
        if li < len(padded_params) - 1:
            out = jnp.maximum(out, 0.0)
            h = out.astype(jnp.bfloat16)
        else:
            h = out
    return h[:n, :hid]


# -----------------------------------------------------------------------------
# Demo / smoke test
# -----------------------------------------------------------------------------
if __name__ == "__main__":
    key = jax.random.PRNGKey(0)

    num_nodes = 300
    in_channels = 8
    hid_channels = 32
    num_unit = 2
    num_edges = 900

    key, kx, ke, ky, kp = jax.random.split(key, 5)
    x = jax.random.normal(kx, (num_nodes, in_channels), jnp.float32)
    edge_index = jax.random.randint(ke, (2, num_edges), 0, num_nodes, jnp.int32)
    # the module returns args[1]; emulate (batch, y)-style extra args
    extra0 = jnp.zeros((num_nodes,), jnp.int32)
    extra1 = jax.random.randint(ky, (num_nodes,), 0, 4, jnp.int32)

    params = init_gin_params(kp, in_channels, hid_channels, num_unit)

    out, passed_through = gin_forward(params, x, edge_index, extra0, extra1)
    jax.block_until_ready(out)
    jax.block_until_ready(passed_through)

    assert out.shape == (num_nodes, hid_channels)
    assert passed_through.shape == extra1.shape

    ref = gin_reference(params, x, edge_index, num_nodes, in_channels, hid_channels)
    assert bool(jnp.all(jnp.isfinite(out)))
    assert bool(jnp.allclose(out, ref, rtol=1e-2, atol=1e-2)), "mismatch vs reference"

    print("KERNEL_OK")
</pallas_src>

<mosaic_0001>
module attributes {stable_mosaic.version = 11 : i64} {
  func.func @gin_conv_kernel(%arg0: i32, %arg1: i32, %arg2: memref<256x512xi8, #tpu.memory_space<vmem>>, %arg3: memref<512x128xbf16, #tpu.memory_space<vmem>>, %arg4: memref<128x128xbf16, #tpu.memory_space<vmem>>, %arg5: memref<1x128xf32, #tpu.memory_space<vmem>>, %arg6: memref<128x128xbf16, #tpu.memory_space<vmem>>, %arg7: memref<1x128xf32, #tpu.memory_space<vmem>>, %arg8: memref<256x128xbf16, #tpu.memory_space<vmem>>, %arg9: memref<256x128xf32, #tpu.memory_space<vmem>>) attributes {dimension_semantics = [#tpu.dimension_semantics<parallel>, #tpu.dimension_semantics<arbitrary>], iteration_bounds = array<i64: 2, 1>, scalar_prefetch = 0 : i64, scratch_operands = 1 : i64, tpu.core_type = #tpu.core_type<tc>, window_params = [{transform_indices = @transform_0, window_bounds = array<i64: 256, 512>}, {pipeline_mode = #tpu.pipeline_mode<synchronous>, transform_indices = @transform_1, window_bounds = array<i64: 512, 128>}, {pipeline_mode = #tpu.pipeline_mode<synchronous>, transform_indices = @transform_2, window_bounds = array<i64: 128, 128>}, {pipeline_mode = #tpu.pipeline_mode<synchronous>, transform_indices = @transform_3, window_bounds = array<i64: 1, 128>}, {pipeline_mode = #tpu.pipeline_mode<synchronous>, transform_indices = @transform_4, window_bounds = array<i64: 128, 128>}, {pipeline_mode = #tpu.pipeline_mode<synchronous>, transform_indices = @transform_5, window_bounds = array<i64: 1, 128>}, {transform_indices = @transform_6, window_bounds = array<i64: 256, 128>}]} {
    %c0_i32 = arith.constant 0 : i32
    %0 = arith.cmpi eq, %arg1, %c0_i32 : i32
    %1 = arith.extui %0 : i1 to i32
    %c0_i32_0 = arith.constant 0 : i32
    %2 = arith.cmpi ne, %1, %c0_i32_0 : i32
    scf.if %2 {
      %cst_9 = arith.constant 0.000000e+00 : f32
      %17 = vector.broadcast %cst_9 : f32 to vector<256x128xf32>
      %c0_10 = arith.constant 0 : index
      %c0_11 = arith.constant 0 : index
      %18 = vector.load %arg9[%c0_10, %c0_11] : memref<256x128xf32, #tpu.memory_space<vmem>>, vector<256x128xf32>
      tpu.vector_store %arg9[%c0_10, %c0_11], %17 {strides = array<i32>} : memref<256x128xf32, #tpu.memory_space<vmem>>, vector<256x128xf32>,
    } else {
    }
    %c512_i32 = arith.constant 512 : i32
    %3 = arith.muli %arg1, %c512_i32 : i32
    %4 = tpu.assume_multiple %3, 512 : i32
    %5 = arith.index_cast %4 : i32 to index
    %c0 = arith.constant 0 : index
    %6 = vector.load %arg3[%5, %c0] : memref<512x128xbf16, #tpu.memory_space<vmem>>, vector<512x128xbf16>
    %c0_1 = arith.constant 0 : index
    %c0_2 = arith.constant 0 : index
    %7 = vector.load %arg2[%c0_1, %c0_2] : memref<256x512xi8, #tpu.memory_space<vmem>>, vector<256x512xi8>
    %8 = arith.sitofp %7 : vector<256x512xi8> to vector<256x512xf32>
    %9 = arith.truncf %8 : vector<256x512xf32> to vector<256x512xbf16>
    %c0_3 = arith.constant 0 : index
    %c0_4 = arith.constant 0 : index
    %10 = vector.load %arg9[%c0_3, %c0_4] : memref<256x128xf32, #tpu.memory_space<vmem>>, vector<256x128xf32>
    %cst = arith.constant dense<0.000000e+00> : vector<256x128xf32>
    %11 = tpu.matmul %9, %6, %cst {dimension_numbers = #tpu.dot_dimension_numbers<[1], [0], [0], [1], [0, 0, 1, 1], [], []>} : vector<256x512xbf16>, vector<512x128xbf16>, vector<256x128xf32> -> vector<256x128xf32>
    %12 = arith.addf %10, %11 : vector<256x128xf32>
    %c0_5 = arith.constant 0 : index
    %c0_6 = arith.constant 0 : index
    %13 = vector.load %arg9[%c0_5, %c0_6] : memref<256x128xf32, #tpu.memory_space<vmem>>, vector<256x128xf32>
    tpu.vector_store %arg9[%c0_5, %c0_6], %12 {strides = array<i32>} : memref<256x128xf32, #tpu.memory_space<vmem>>, vector<256x128xf32>,
    %c0_i32_7 = arith.constant 0 : i32
    %14 = arith.cmpi eq, %arg1, %c0_i32_7 : i32
    %15 = arith.extui %14 : i1 to i32
    %c0_i32_8 = arith.constant 0 : i32
    %16 = arith.cmpi ne, %15, %c0_i32_8 : i32
    scf.if %16 {
      %c0_9 = arith.constant 0 : index
      %c0_10 = arith.constant 0 : index
      %17 = vector.load %arg9[%c0_9, %c0_10] : memref<256x128xf32, #tpu.memory_space<vmem>>, vector<256x128xf32>
      %18 = arith.truncf %17 : vector<256x128xf32> to vector<256x128xbf16>
      %c0_11 = arith.constant 0 : index
      %c0_12 = arith.constant 0 : index
      %19 = vector.load %arg4[%c0_11, %c0_12] : memref<128x128xbf16, #tpu.memory_space<vmem>>, vector<128x128xbf16>
      %cst_13 = arith.constant dense<0.000000e+00> : vector<256x128xf32>
      %20 = tpu.matmul %18, %19, %cst_13 {dimension_numbers = #tpu.dot_dimension_numbers<[1], [0], [0], [1], [0, 0, 1, 1], [], []>} : vector<256x128xbf16>, vector<128x128xbf16>, vector<256x128xf32> -> vector<256x128xf32>
      %c0_14 = arith.constant 0 : index
      %c0_15 = arith.constant 0 : index
      %21 = vector.load %arg5[%c0_14, %c0_15] : memref<1x128xf32, #tpu.memory_space<vmem>>, vector<1x128xf32>
      %22 = vector.broadcast %21 : vector<1x128xf32> to vector<256x128xf32>
      %23 = arith.addf %20, %22 : vector<256x128xf32>
      %cst_16 = arith.constant 0.000000e+00 : f32
      %24 = vector.broadcast %cst_16 : f32 to vector<256x128xf32>
      %25 = arith.maximumf %23, %24 : vector<256x128xf32>
      %26 = arith.truncf %25 : vector<256x128xf32> to vector<256x128xbf16>
      %c0_17 = arith.constant 0 : index
      %c0_18 = arith.constant 0 : index
      %27 = vector.load %arg6[%c0_17, %c0_18] : memref<128x128xbf16, #tpu.memory_space<vmem>>, vector<128x128xbf16>
      %cst_19 = arith.constant dense<0.000000e+00> : vector<256x128xf32>
      %28 = tpu.matmul %26, %27, %cst_19 {dimension_numbers = #tpu.dot_dimension_numbers<[1], [0], [0], [1], [0, 0, 1, 1], [], []>} : vector<256x128xbf16>, vector<128x128xbf16>, vector<256x128xf32> -> vector<256x128xf32>
      %c0_20 = arith.constant 0 : index
      %c0_21 = arith.constant 0 : index
      %29 = vector.load %arg7[%c0_20, %c0_21] : memref<1x128xf32, #tpu.memory_space<vmem>>, vector<1x128xf32>
      %30 = vector.broadcast %29 : vector<1x128xf32> to vector<256x128xf32>
      %31 = arith.addf %28, %30 : vector<256x128xf32>
      %cst_22 = arith.constant 0.000000e+00 : f32
      %32 = vector.broadcast %cst_22 : f32 to vector<256x128xf32>
      %33 = arith.maximumf %31, %32 : vector<256x128xf32>
      %34 = arith.truncf %33 : vector<256x128xf32> to vector<256x128xbf16>
      %c0_23 = arith.constant 0 : index
      %c0_24 = arith.constant 0 : index
      %35 = vector.load %arg8[%c0_23, %c0_24] : memref<256x128xbf16, #tpu.memory_space<vmem>>, vector<256x128xbf16>
      tpu.vector_store %arg8[%c0_23, %c0_24], %34 {strides = array<i32>} : memref<256x128xbf16, #tpu.memory_space<vmem>>, vector<256x128xbf16>,
    } else {
    }
    return
  }
  func.func @transform_0(%arg0: i32, %arg1: i32) -> (i32, i32) {
    %c0_i32 = arith.constant 0 : i32
    return %arg0, %arg1 : i32, i32
  }
  func.func @transform_1(%arg0: i32, %arg1: i32) -> (i32, i32) {
    %c0_i32 = arith.constant 0 : i32
    %c0_i32_0 = arith.constant 0 : i32
    %c0_i32_1 = arith.constant 0 : i32
    return %c0_i32, %c0_i32_0 : i32, i32
  }
  func.func @transform_2(%arg0: i32, %arg1: i32) -> (i32, i32) {
    %c0_i32 = arith.constant 0 : i32
    %c0_i32_0 = arith.constant 0 : i32
    %c0_i32_1 = arith.constant 0 : i32
    return %c0_i32, %c0_i32_0 : i32, i32
  }
  func.func @transform_3(%arg0: i32, %arg1: i32) -> (i32, i32) {
    %c0_i32 = arith.constant 0 : i32
    %c0_i32_0 = arith.constant 0 : i32
    %c0_i32_1 = arith.constant 0 : i32
    return %c0_i32, %c0_i32_0 : i32, i32
  }
  func.func @transform_4(%arg0: i32, %arg1: i32) -> (i32, i32) {
    %c0_i32 = arith.constant 0 : i32
    %c0_i32_0 = arith.constant 0 : i32
    %c0_i32_1 = arith.constant 0 : i32
    return %c0_i32, %c0_i32_0 : i32, i32
  }
  func.func @transform_5(%arg0: i32, %arg1: i32) -> (i32, i32) {
    %c0_i32 = arith.constant 0 : i32
    %c0_i32_0 = arith.constant 0 : i32
    %c0_i32_1 = arith.constant 0 : i32
    return %c0_i32, %c0_i32_0 : i32, i32
  }
  func.func @transform_6(%arg0: i32, %arg1: i32) -> (i32, i32) {
    %c0_i32 = arith.constant 0 : i32
    %c0_i32_0 = arith.constant 0 : i32
    return %arg0, %c0_i32 : i32, i32
  }
}

</mosaic_0001>

<bundles_post_ra>
// kernel: tpu_custom_call.1
= control target key start
LH: loop header
LB: loop body
LE: loop exit
PB: predicated region body
PF: predicated region fallthrough
CT: control target
= control target key end

     0   :  { %s3349_s0 = inlined_call_operand.hbm [shape: s8[512,512], index: 0, kind: input, shape index: {}]   ;;  %s3350_s1 = inlined_call_operand.hbm [shape: bf16[512,128], index: 1, kind: input, shape index: {}]   ;;  %s3351_s2 = inlined_call_operand.hbm [shape: bf16[128,128], index: 2, kind: input, shape index: {}]   ;;  %s3352_s3 = inlined_call_operand.vmem [shape: f32[1,128], index: 3, kind: input, shape index: {}]   ;;  %s3353_s4 = inlined_call_operand.hbm [shape: bf16[128,128], index: 4, kind: input, shape index: {}]   ;;  %s3354_s5 = inlined_call_operand.vmem [shape: f32[1,128], index: 5, kind: input, shape index: {}]   ;;  %s3355_s6 = inlined_call_operand.hbm [shape: bf16[512,128], index: 6, kind: output, shape index: {}]  }
   0x1   :  { %3360 = sst [smem:[#allocation16_spill]] %s3350_s1 }
   0x2   :  { %3361 = sst [smem:[#allocation17_spill]] %s3351_s2 }
   0x3   :  { %11 = vsyncpa [#allocation4], 0 }
   0x4   :  { %13 = vsyncpa [#allocation4 + $0x1], 0 }
   0x5   :  { %14 = vsyncpa [#allocation7], 0 }
   0x6   :  { %15 = vsyncpa [#allocation10], 0 }
   0x7   :  { %16 = vsyncpa [#allocation5], 0 }
   0x8   :  { %18 = vsyncpa [#allocation5 + $0x1], 0  ;;  %s3021_s21 = smov 0   ;;  %s3023_s22 = smov 0  }
   0x9   :  { %s3025_s23 = smov 0   ;;  %s3027_s24 = smov 0  }
   0xa   :  { %s3029_s25 = smov 0   ;;  %s3031_s26 = smov 0  }
   0xb LB: > { %s2030_s27 = sadd.s32 4294967295, %s2973_s26   ;;  %s2031_s28 = sadd.s32 4294967294, %s2973_s26   ;;  %s2973_s26 = sphi %s3031_s26, %s24_s26   ;;  %s2969_s25 = sphi %s3029_s25, %s3381_s25   ;;  %s2965_s24 = sphi %s3027_s24, %s3380_s24   ;;  %s2961_s23 = sphi %s3025_s23, %s3379_s23   ;;  %s2957_s22 = sphi %s3023_s22, %s3378_s22   ;;  %s2953_s21 = sphi %s3021_s21, %s3377_s21  }
   0xc   : > { %p58_p0 = scmp.ne.s32.totalorder %s2957_s22, %s2953_s21  ;;  %p3055_p1 = scmp.eq.s32.totalorder %s2030_s27, 0 }
   0xd   : > { %p3059_p2 = scmp.eq.s32.totalorder %s2030_s27, 1  ;;  %p193_p3 = scmp.eq.s32.totalorder %s2031_s28, 1 }
   0xe   : > { %s3362_s29 = scalar_select %p3055_p1, 1, 0 }
   0xf   : > { %p3065_p4 = por %p3055_p1, %p58_p0  ;;  %p2032_p5 = scmp.ge.s32.totalorder %s2973_s26, 1 }
  0x10   : > { %p3070_p6 = por %p193_p3, %p58_p0  ;;  %p200_p7 = scmp.lt.s32.totalorder %s2973_s26, 3 }
  0x11   : > { %s3364_s7 = scalar_select %p3065_p4, 1, 0 }
  0x12   : > { %s3365_s8 = scalar_select %p3070_p6, 1, 0 }
  0x13   : > { %p3075_p8 = pnand %p2032_p5, %p200_p7  ;;  %s2975_s10 = smov [#allocation6]  }
  0x14   : > { %s212_s11 = sshll.u32 %s2975_s10, 4  ;;  %s2976_s13 = smov [#allocation8]   ;;  %s213_s11 = int_to_ptr.vmem [resolvable:$true] %s212_s11 }
  0x15   : > { %s3366_s9 = scalar_select %p3075_p8, 1, 0 }
  0x16   : > { %p2648_p9 = pneg %p3075_p8  ;;  %s225_s14 = sshll.u32 %s2976_s13, 4  ;;  %s226_s14 = int_to_ptr.vmem [resolvable:$true] %s225_s14 }
  0x17   : > { %s2977_s15 = smov [#allocation9]   ;;  %s2790_s17 = scalar_lea.vmem %s213_s11, 4096 }
  0x18   : > { %p3084_p11 = pnand %p2648_p9, %p3055_p1  ;;  %s241_s16 = sshll.u32 %s2977_s15, 4  ;;  %s242_s16 = int_to_ptr.vmem [resolvable:$true] %s241_s16 }
  0x19   : > { %p2791_p13 = scmp.ne.s32.totalorder %s213_s11, %s2790_s17  ;;  %p2798_p5 = scmp.lt.s32.totalorder %s213_s11, %s213_s11 }
  0x1a   : > { %p2781_p12 = pneg %p3084_p11  ;;  %p2799_p7 = scmp.lt.s32.totalorder %s2790_s17, %s2790_s17 }
  0x1c   : > { %p2793_p0 = pnand %p2791_p13, %p2781_p12  ;;  %p2800_p9 = por %p2799_p7, %p2798_p5 }
  0x1e   : > { %p2794_p3 = pneg %p2793_p0 }
  0x20   : > { %p2801_p10 = pnand %p2800_p9, %p2794_p3 }
  0x22   : > { %2804 = shalt.err (!%p2801_p10)
}
  0x23   : > { %s2978_s18 = smov 64   ;;  %s2979_s19 = smov 4  }
  0x24   : > { %s3368_s1 = sld [smem:[#allocation16_spill]]  ;;  %s2816_s28 = scalar_lea.vmem %s226_s14, 1024 }
  0x25   : > { %p2817_p6 = scmp.ne.s32.totalorder %s226_s14, %s2816_s28  ;;  %p2824_p1 = scmp.lt.s32.totalorder %s226_s14, %s226_s14 }
  0x26   : > { %p2825_p4 = scmp.lt.s32.totalorder %s2816_s28, %s2816_s28 }
  0x27   : > { %p2819_p13 = pnand %p2817_p6, %p2781_p12 }
  0x28   : > { %p2826_p5 = por %p2825_p4, %p2824_p1 }
  0x29   : > { %p2820_p0 = pneg %p2819_p13 }
  0x2a   : > { %2651 = dma.hbm_to_vmem [thread:$0]  (!%p3084_p11), %s3368_s1, 4096, %s213_s11, [#allocation7], %s2978_s18, %s2978_s18, %s2979_s19  }
  0x2b   : > { %p2827_p3 = pnand %p2826_p5, %p2820_p0 }
  0x2d   : > { %2830 = shalt.err (!%p2827_p3)
}
  0x2e   : > { %s3369_s2 = sld [smem:[#allocation17_spill]]  ;;  %s2842_s11 = scalar_lea.vmem %s242_s16, 1024 }
  0x2f   : > { %p2843_p10 = scmp.ne.s32.totalorder %s242_s16, %s2842_s11  ;;  %p2850_p9 = scmp.lt.s32.totalorder %s242_s16, %s242_s16 }
  0x30   : > { %p2851_p13 = scmp.lt.s32.totalorder %s2842_s11, %s2842_s11 }
  0x31   : > { %p2845_p7 = pnand %p2843_p10, %p2781_p12 }
  0x32   : > { %p2852_p8 = por %p2851_p13, %p2850_p9 }
  0x33   : > { %p2846_p6 = pneg %p2845_p7 }
  0x34   : > { %2654 = dma.hbm_to_vmem [thread:$0]  (!%p3084_p11), %s3369_s2, 1024, %s226_s14, [#allocation7], %s2978_s18, %s2978_s18, %s2979_s19  }
  0x35   : > { %p2853_p1 = pnand %p2852_p8, %p2846_p6 }
  0x37   : > { %2856 = shalt.err (!%p2853_p1)
}
  0x38   : > { %2657 = dma.hbm_to_vmem [thread:$0]  (!%p3084_p11), %s3353_s4, 1024, %s242_s16, [#allocation10], %s2978_s18, %s2978_s18, %s2979_s19  }
  0x39   : > { %s45_s14 = sadd.s32 1, %s2961_s23  ;;  %s36_s20 = sadd.s32 1, %s2969_s25 }
  0x3a   : > { %p52_p4 = scmp.ne.s32.totalorder %s2961_s23, %s2957_s22  ;;  %p38_p8 = scmp.ge.s32.totalorder %s36_s20, 2 }
  0x3b   : > { %p53_p12 = scmp.eq.s32.totalorder %s2973_s26, 0  ;;  %p2669_p5 = scmp.lt.s32.totalorder %s2973_s26, 2 }
  0x3c   : > { %p3121_p0 = por %p3059_p2, %p52_p4  ;;  %s3383_s20 = smov (%p38_p8, %s36_s20), 0 }
  0x3d   : > { %p54_p3 = por %p53_p12, %p52_p4  ;;  %s258_s27 = sand.u32 1, %s2961_s23  }
  0x3e   : > { %s40_s28 = ssub.s32 %s2969_s25, %s3383_s20  ;;  %s2037_s16 = sshll.u32 %s258_s27, 8 }
  0x3f   : > { %p43_p10 = scmp.eq.s32.totalorder %s40_s28, 0  ;;  %s2135_s18 = sshll.u32 %s2969_s25, 12 }
  0x40   : > { %s271_s30 = scalar_lea.hbm %s3349_s0, %s2135_s18  ;;  %s262_s11 = scalar_lea.vmem [#allocation3], %s2037_s16 }
  0x41   : > { %s3133_s19 = scalar_select %p43_p10, %s2961_s23, %s45_s14  }
  0x42   : > { %s272_s15 = sshll.u32 %s262_s11, 4  ;;  %p3140_p2 = pnand %p2669_p5, %p54_p3  ;;  %s273_s15 = int_to_ptr.vmem [resolvable:$true] %s272_s15 }
  0x43   : > { %s259_s1 = scalar_lea.sflag [#allocation4], %s258_s27  ;;  %s2870_s28 = scalar_lea.vmem %s273_s15, 4096 }
  0x44   : > { %p2859_p11 = pneg %p3140_p2  ;;  %p2871_p7 = scmp.ne.s32.totalorder %s273_s15, %s2870_s28 }
  0x45   : > { %s2980_s14 = smov [#allocation3]  }
  0x46   : > { %p2873_p6 = pnand %p2871_p7, %p2859_p11  ;;  %s2875_s2 = sshll.u32 %s2980_s14, 4  ;;  %s2876_s2 = int_to_ptr.vmem [resolvable:$false] %s2875_s2 }
  0x47   : > { %s2877_s18 = scalar_lea.vmem %s2876_s2, 8192  ;;  %p2878_p13 = scmp.lt.s32.totalorder %s273_s15, %s2876_s2 }
  0x48   : > { %p2874_p9 = pneg %p2873_p6  ;;  %p2879_p1 = scmp.lt.s32.totalorder %s2877_s18, %s2870_s28 }
  0x4a   : > { %p2880_p4 = por %p2879_p1, %p2878_p13 }
  0x4c   : > { %p2881_p8 = pnand %p2880_p4, %p2874_p9 }
  0x4e   : > { %2884 = shalt.err (!%p2881_p8)
}
  0x4f   : > { %s2981_s16 = smov 512   ;;  %s2982_s10 = smov 32  }
  0x50   : > { %2661 = dma.hbm_to_vmem [thread:$0]  (!%p3140_p2), %s271_s30, 4096, %s273_s15, %s259_s1, %s2981_s16, %s2981_s16, %s2982_s10  }
  0x51   : > { %p3372_p12 = scmp.ne.s32.totalorder %s3366_s9, 0 }
  0x52   : > { %s3151_s27 = sand.u32 (!%p3372_p12), 1, %s2957_s22   ;;  %p3373_p5 = scmp.ne.s32.totalorder (!%p3372_p12), %s3364_s7, 0 }
  0x53   : > { %284 = sbr.rel (%p3372_p12) target bundleno = 879 (0x36f), region = 44  ;;  %s2042_s13 = sshll.u32 (!%p3372_p12), %s3151_s27, 8 }
  0x54   : > { %s287_s2 = scalar_lea.sflag (!%p3372_p12), [#allocation4], %s3151_s27  ;;  %s3155_s11 = scalar_lea.vmem (!%p3372_p12), [#allocation3], %s2042_s13 }
  0x58   : > { %2936 = dma.done.wait (%p3373_p5), %s287_s2, 4096  }
  0x59   : > { %2938 = vsyncadd (%p3373_p5), %s287_s2, 4294963200  ;;  %p3374_p3 = scmp.ne.s32.totalorder %s3362_s29, 0 }
  0x5b   : > { %2940 = dma.done.wait (%p3374_p3), [#allocation7], 5120  }
  0x5c   : > { %2942 = vsyncadd (%p3374_p3), [#allocation7], 4294962176 }
  0x5d   : > { %2944 = dma.done.wait (%p3374_p3), [#allocation10], 1024  }
  0x5e   : > { %2946 = vsyncadd (%p3374_p3), [#allocation10], 4294966272  ;;  %v2731_v0 = vld [vmem:[#allocation6 + $0x78] sm:$0xff]   ;;  %v2735_v4 = vld [vmem:[#allocation6 + $0x70] sm:$0xff]   ;;  %s2046_s30 = sshll.u32 %s3151_s27, 7  ;;  %s2168_s17 = sshll.u32 %s2965_s24, 11 }
  0x5f   : > { %v2732_v1 = vld [vmem:[#allocation6 + $0xf8] sm:$0xff]   ;;  %2264 = vmatprep.subr.bf16.mxu0 %v2731_v0  ;;  %v2736_v5 = vld [vmem:[#allocation6 + $0xf0] sm:$0xff]   ;;  %v2739_v8 = vld [vmem:[#allocation6 + $0x68] sm:$0xff]   ;;  %s3248_s15 = scalar_lea.vmem [#allocation11], %s2046_s30  ;;  %s3297_s16 = scalar_lea.hbm %s3355_s6, %s2168_s17 }
  0x60   : > { %v2733_v2 = vld [vmem:[#allocation6 + $0x38] sm:$0xff]   ;;  %2376 = vmatprep.subr.bf16.mxu1 %v2732_v1  ;;  %v2737_v6 = vld [vmem:[#allocation6 + $0x30] sm:$0xff]   ;;  %v2740_v9 = vld [vmem:[#allocation6 + $0xe8] sm:$0xff]   ;;  %s1915_s28 = sshll.u32 %s3248_s15, 4  ;;  %s1902_s10 = scalar_lea.sflag [#allocation5], %s3151_s27  ;;  %s3299_s28 = int_to_ptr.vmem [resolvable:$true] %s1915_s28 }
  0x61   : > { %v2734_v3 = vld [vmem:[#allocation6 + $0xb8] sm:$0xff]   ;;  %2265 = vmatpush3.bf16.msra.mxu0 %v2733_v2  ;;  %v2738_v7 = vld [vmem:[#allocation6 + $0xb0] sm:$0xff]   ;;  %v2741_v10 = vld [vmem:[#allocation6 + $0x28] sm:$0xff]   ;;  %s2885_s13 = scalar_lea.vmem %s3299_s28, 2048  ;;  %s2983_s24 = smov [#allocation11]  }
  0x62   : > { %2377 = vmatpush3.bf16.msra.mxu1 %v2734_v3  ;;  %2266 = vmatprep.subr.bf16.mxu0 %v2735_v4  ;;  %v2742_v11 = vld [vmem:[#allocation6 + $0xa8] sm:$0xff]   ;;  %v2743_v12 = vld [vmem:[#allocation6 + $0x60] sm:$0xff]   ;;  %v2747_v16 = vld [vmem:[#allocation6 + $0x58] sm:$0xff]   ;;  %p2886_p10 = scmp.ne.s32.totalorder %s3299_s28, %s2885_s13  ;;  %s2889_s2 = sshll.u32 %s2983_s24, 4  ;;  %s2890_s2 = int_to_ptr.vmem [resolvable:$false] %s2889_s2 }
  0x63   : > { %2378 = vmatprep.subr.bf16.mxu1 %v2736_v5  ;;  %v2744_v13 = vld [vmem:[#allocation6 + $0xe0] sm:$0xff]   ;;  %v2748_v17 = vld [vmem:[#allocation6 + $0xd8] sm:$0xff]   ;;  %v2751_v20 = vld [vmem:[#allocation6 + $0x50] sm:$0xff]   ;;  %p2892_p7 = scmp.lt.s32.totalorder %s3299_s28, %s2890_s2 }
  0x64   : > { %v2745_v14 = vld [vmem:[#allocation6 + $0x20] sm:$0xff]   ;;  %v2749_v18 = vld [vmem:[#allocation6 + $0x18] sm:$0xff]   ;;  %v2752_v21 = vld [vmem:[#allocation6 + $0xd0] sm:$0xff]   ;;  %p2887_p2 = pnand %p2886_p10, %p3121_p0 }
  0x65   : > { %2267 = vmatpush3.bf16.msra.mxu0 %v2737_v6  ;;  %v2746_v15 = vld [vmem:[#allocation6 + $0xa0] sm:$0xff]   ;;  %v2750_v19 = vld [vmem:[#allocation6 + $0x98] sm:$0xff]   ;;  %v2753_v22 = vld [vmem:[#allocation6 + $0x10] sm:$0xff]  }
  0x66   : > { %2379 = vmatpush3.bf16.msra.mxu1 %v2738_v7  ;;  %2268 = vmatprep.subr.bf16.mxu0 %v2739_v8  ;;  %v2754_v23 = vld [vmem:[#allocation6 + $0x90] sm:$0xff]   ;;  %v2755_v24 = vld [vmem:[#allocation6 + $0x48] sm:$0xff]   ;;  %v2759_v28 = vld [vmem:[#allocation6 + $0x40] sm:$0xff]   ;;  %p2888_p11 = pneg %p2887_p2 }
  0x67   : > { %2380 = vmatprep.subr.bf16.mxu1 %v2740_v9  ;;  %v2756_v25 = vld [vmem:[#allocation6 + $0xc8] sm:$0xff]   ;;  %v2760_v29 = vld [vmem:[#allocation6 + $0xc0] sm:$0xff]   ;;  %v443_v33 = vld [vmem:[%s3155_s11 + $0x18] sm:$0xff] }
  0x68   : > { %v2757_v26 = vld [vmem:[#allocation6 + $0x8] sm:$0xff]   ;;  %v2761_v30 = vld [vmem:[#allocation6] sm:$0xff]   ;;  %v475_v37 = vunpack.c.l.s8.bf16 %v443_v33  ;;  %v479_v38 = vunpack.c.h.s8.bf16 %v443_v33  ;;  %v442_v39 = vld [vmem:[%s3155_s11 + $0x10] sm:$0xff] }
  0x69   : > { %2269 = vmatpush3.bf16.msra.mxu0 %v2741_v10  ;;  %v2758_v27 = vld [vmem:[#allocation6 + $0x88] sm:$0xff]   ;;  %v2762_v31 = vld [vmem:[#allocation6 + $0x80] sm:$0xff]   ;;  %v474_v41 = vunpack.c.l.s8.bf16 %v442_v39  ;;  %v447_v43 = vld [vmem:[%s3155_s11 + $0x38] sm:$0xff]  ;;  %v478_v45 = vunpack.c.h.s8.bf16 %v442_v39 }
  0x6a   : > { %2381 = vmatpush3.bf16.msra.mxu1 %v2742_v11  ;;  %2270 = vmatprep.subr.bf16.mxu0 %v2743_v12  ;;  %v441_v32 = vld [vmem:[%s3155_s11 + $0x8] sm:$0xff]  ;;  %v440_v34 = vld [vmem:[%s3155_s11] sm:$0xff]  ;;  %v483_v47 = vunpack.c.l.s8.bf16 %v447_v43  ;;  %v2763_v49 = vld [vmem:[#allocation8 + $0x38] sm:$0xff]   ;;  %v487_v56 = vunpack.c.h.s8.bf16 %v447_v43 }
  0x6b   : > { %2382 = vmatprep.subr.bf16.mxu1 %v2744_v13  ;;  %v473_v35 = vunpack.c.l.s8.bf16 %v441_v32  ;;  %v477_v36 = vunpack.c.h.s8.bf16 %v441_v32  ;;  %v472_v40 = vunpack.c.l.s8.bf16 %v440_v34  ;;  %953 = vmatprep.mubr.bf16.mxu1 %v475_v37  ;;  %v445_v42 = vld [vmem:[%s3155_s11 + $0x28] sm:$0xff]  ;;  %v476_v44 = vunpack.c.h.s8.bf16 %v440_v34  ;;  %v444_v48 = vld [vmem:[%s3155_s11 + $0x20] sm:$0xff]  ;;  %v2764_v50 = vld [vmem:[#allocation8 + $0x30] sm:$0xff]  }
  0x6c   : > { %v481_v46 = vunpack.c.l.s8.bf16 %v445_v42  ;;  %v446_v51 = vld [vmem:[%s3155_s11 + $0x30] sm:$0xff]  ;;  %v480_v52 = vunpack.c.l.s8.bf16 %v444_v48  ;;  %v2765_v54 = vld [vmem:[#allocation8 + $0x28] sm:$0xff]   ;;  %v485_v55 = vunpack.c.h.s8.bf16 %v445_v42  ;;  %v2766_v57 = vld [vmem:[#allocation8 + $0x20] sm:$0xff]   ;;  %v484_v60 = vunpack.c.h.s8.bf16 %v444_v48 }
  0x6d   : > { %2271 = vmatpush3.bf16.msra.mxu0 %v2745_v14  ;;  %792 = vmatprep.mubr.bf16.mxu0 %v473_v35  ;;  %v482_v53 = vunpack.c.l.s8.bf16 %v446_v51  ;;  %v449_v58 = vld [vmem:[%s3155_s11 + $0x48] sm:$0xff]  ;;  %v451_v59 = vld [vmem:[%s3155_s11 + $0x58] sm:$0xff]  ;;  %v486_v61 = vunpack.c.h.s8.bf16 %v446_v51  ;;  %v448_v0 = vld [vmem:[%s3155_s11 + $0x40] sm:$0xff] }
  0x6e   : > { %2383 = vmatpush3.bf16.msra.mxu1 %v2746_v15  ;;  %2272 = vmatprep.subr.bf16.mxu0 %v2747_v16  ;;  %v489_v62 = vunpack.c.l.s8.bf16 %v449_v58  ;;  %v491_v63 = vunpack.c.l.s8.bf16 %v451_v59  ;;  %v450_v1 = vld [vmem:[%s3155_s11 + $0x50] sm:$0xff]  ;;  %v488_v2 = vunpack.c.l.s8.bf16 %v448_v0  ;;  %v493_v4 = vunpack.c.h.s8.bf16 %v449_v58  ;;  %v453_v6 = vld [vmem:[%s3155_s11 + $0x68] sm:$0xff]  ;;  %v455_v7 = vld [vmem:[%s3155_s11 + $0x78] sm:$0xff] }
  0x6f   : > { %2384 = vmatprep.subr.bf16.mxu1 %v2748_v17  ;;  %v490_v3 = vunpack.c.l.s8.bf16 %v450_v1  ;;  %v495_v5 = vunpack.c.h.s8.bf16 %v451_v59  ;;  %v492_v8 = vunpack.c.h.s8.bf16 %v448_v0  ;;  %v494_v9 = vunpack.c.h.s8.bf16 %v450_v1  ;;  %v452_v12 = vld [vmem:[%s3155_s11 + $0x60] sm:$0xff]  ;;  %v454_v13 = vld [vmem:[%s3155_s11 + $0x70] sm:$0xff]  ;;  %v2767_v32 = vld [vmem:[#allocation8 + $0x18] sm:$0xff]  }
  0x70   : > { %v497_v10 = vunpack.c.l.s8.bf16 %v453_v6  ;;  %v499_v11 = vunpack.c.l.s8.bf16 %v455_v7  ;;  %v496_v14 = vunpack.c.l.s8.bf16 %v452_v12  ;;  %v498_v15 = vunpack.c.l.s8.bf16 %v454_v13  ;;  %v2768_v37 = vld [vmem:[#allocation8 + $0x10] sm:$0xff]   ;;  %v469_v58 = vld [vmem:[%s3155_s11 + $0xe8] sm:$0xff]  ;;  %v471_v59 = vld [vmem:[%s3155_s11 + $0xf8] sm:$0xff] }
  0x71   : > { %2273 = vmatpush3.bf16.msra.mxu0 %v2749_v18  ;;  %v501_v16 = vunpack.c.h.s8.bf16 %v453_v6  ;;  %v503_v17 = vunpack.c.h.s8.bf16 %v455_v7  ;;  %v457_v18 = vld [vmem:[%s3155_s11 + $0x88] sm:$0xff]  ;;  %v462_v39 = vld [vmem:[%s3155_s11 + $0xb0] sm:$0xff]  ;;  %v468_v0 = vld [vmem:[%s3155_s11 + $0xe0] sm:$0xff] }
  0x72   : > { %2385 = vmatpush3.bf16.msra.mxu1 %v2750_v19  ;;  %2274 = vmatprep.subr.bf16.mxu0 %v2751_v20  ;;  %v459_v19 = vld [vmem:[%s3155_s11 + $0x98] sm:$0xff]  ;;  %v500_v20 = vunpack.c.h.s8.bf16 %v452_v12  ;;  %v514_v42 = vunpack.c.l.s8.bf16 %v462_v39  ;;  %v470_v1 = vld [vmem:[%s3155_s11 + $0xf0] sm:$0xff]  ;;  %v532_v6 = vunpack.c.h.s8.bf16 %v468_v0 }
  0x73   : > { %2386 = vmatprep.subr.bf16.mxu1 %v2752_v21  ;;  %v502_v21 = vunpack.c.h.s8.bf16 %v454_v13  ;;  %v534_v7 = vunpack.c.h.s8.bf16 %v470_v1 }
  0x75   : > { %2275 = vmatpush3.bf16.msra.mxu0 %v2753_v22  ;;  %v505_v22 = vunpack.c.l.s8.bf16 %v457_v18 }
  0x76   : > { %2387 = vmatpush3.bf16.msra.mxu1 %v2754_v23  ;;  %2276 = vmatprep.subr.bf16.mxu0 %v2755_v24  ;;  %v507_v23 = vunpack.c.l.s8.bf16 %v459_v19  ;;  %v456_v24 = vld [vmem:[%s3155_s11 + $0x80] sm:$0xff] }
  0x77   : > { %2388 = vmatprep.subr.bf16.mxu1 %v2756_v25  ;;  %v458_v25 = vld [vmem:[%s3155_s11 + $0x90] sm:$0xff]  ;;  %v508_v33 = vunpack.c.h.s8.bf16 %v456_v24 }
  0x78   : > { %v510_v34 = vunpack.c.h.s8.bf16 %v458_v25 }
  0x79   : > { %2277 = vmatpush3.bf16.msra.mxu0 %v2757_v26  ;;  %v504_v26 = vunpack.c.l.s8.bf16 %v456_v24 }
  0x7a   : > { %2389 = vmatpush3.bf16.msra.mxu1 %v2758_v27  ;;  %2278 = vmatprep.subr.bf16.mxu0 %v2759_v28  ;;  %v506_v27 = vunpack.c.l.s8.bf16 %v458_v25  ;;  %v509_v28 = vunpack.c.h.s8.bf16 %v457_v18 }
  0x7b   : > { %2390 = vmatprep.subr.bf16.mxu1 %v2760_v29  ;;  %v511_v29 = vunpack.c.h.s8.bf16 %v459_v19 }
  0x7d   : > { %2279 = vmatpush3.bf16.msra.mxu0 %v2761_v30  ;;  %v461_v30 = vld [vmem:[%s3155_s11 + $0xa8] sm:$0xff] }
  0x7e   : > { %2391 = vmatpush3.bf16.msra.mxu1 %v2762_v31  ;;  %2536 = vmatprep.subr.bf16.mxu0 %v2763_v49  ;;  %v463_v31 = vld [vmem:[%s3155_s11 + $0xb8] sm:$0xff]  ;;  %v513_v35 = vunpack.c.l.s8.bf16 %v461_v30  ;;  %v517_v43 = vunpack.c.h.s8.bf16 %v461_v30 }
  0x80   : > { %793 = vmatmul.mubr.bf16.vlgmr.msra.gmra.mxu0 %v472_v40  ;;  %v2769_v40 = vld [vmem:[#allocation8 + $0x8] sm:$0xff]  }
  0x81   : > { %954 = vmatmul.mubr.bf16.vlgmr.msra.gmra.mxu1 %v474_v41  ;;  %800 = vmatprep.mubr.bf16.mxu0 %v477_v36  ;;  %v515_v36 = vunpack.c.l.s8.bf16 %v463_v31 }
  0x82   : > { %961 = vmatprep.mubr.bf16.mxu1 %v479_v38  ;;  %2537 = vmatpush3.bf16.msra.mxu0 %v2763_v49  ;;  %v460_v38 = vld [vmem:[%s3155_s11 + $0xa0] sm:$0xff]  ;;  %v518_v49 = vunpack.c.h.s8.bf16 %v462_v39 }
  0x83   : > { %2538 = vmatprep.subr.bf16.mxu0 %v2764_v50  ;;  %v512_v41 = vunpack.c.l.s8.bf16 %v460_v38  ;;  %v516_v48 = vunpack.c.h.s8.bf16 %v460_v38 }
  0x86   : > { %2539 = vmatpush3.bf16.msra.mxu0 %v2764_v50 }
  0x87   : > { %2540 = vmatprep.subr.bf16.mxu0 %v2765_v54 }
  0x88   : > { %801 = vmatmul.mubr.bf16.gmra.mxu0 %v476_v44  ;;  %v519_v44 = vunpack.c.h.s8.bf16 %v463_v31 }
  0x89   : > { %962 = vmatmul.mubr.bf16.gmra.mxu1 %v478_v45  ;;  %808 = vmatprep.mubr.bf16.mxu0 %v481_v46  ;;  %v2770_v45 = vld [vmem:[#allocation8] sm:$0xff]   ;;  %v465_v46 = vld [vmem:[%s3155_s11 + $0xc8] sm:$0xff] }
  0x8a   : > { %969 = vmatprep.mubr.bf16.mxu1 %v483_v47  ;;  %2541 = vmatpush3.bf16.msra.mxu0 %v2765_v54  ;;  %v467_v47 = vld [vmem:[%s3155_s11 + $0xd8] sm:$0xff]  ;;  %v521_v50 = vunpack.c.l.s8.bf16 %v465_v46 }
  0x8b   : > { %2542 = vmatprep.subr.bf16.mxu0 %v2766_v57  ;;  %v523_v51 = vunpack.c.l.s8.bf16 %v467_v47 }
  0x8e   : > { %2543 = vmatpush3.bf16.msra.mxu0 %v2766_v57  ;;  %v527_v57 = vunpack.c.h.s8.bf16 %v467_v47 }
  0x8f   : > { %2544 = vmatprep.subr.bf16.mxu0 %v2767_v32 }
  0x90   : > { %809 = vmatmul.mubr.bf16.gmra.mxu0 %v480_v52  ;;  %v464_v52 = vld [vmem:[%s3155_s11 + $0xc0] sm:$0xff] }
  0x91   : > { %970 = vmatmul.mubr.bf16.gmra.mxu1 %v482_v53  ;;  %816 = vmatprep.mubr.bf16.mxu0 %v485_v55  ;;  %v466_v53 = vld [vmem:[%s3155_s11 + $0xd0] sm:$0xff]  ;;  %v520_v54 = vunpack.c.l.s8.bf16 %v464_v52  ;;  %s2891_s11 = scalar_lea.vmem %s2890_s2, 4096 }
  0x92   : > { %977 = vmatprep.mubr.bf16.mxu1 %v487_v56  ;;  %2545 = vmatpush3.bf16.msra.mxu0 %v2767_v32  ;;  %v522_v55 = vunpack.c.l.s8.bf16 %v466_v53  ;;  %v525_v56 = vunpack.c.h.s8.bf16 %v465_v46  ;;  %p2893_p6 = scmp.lt.s32.totalorder %s2891_s11, %s2885_s13 }
  0x93   : > { %2546 = vmatprep.subr.bf16.mxu0 %v2768_v37 }
  0x94   : > { %p2894_p9 = por %p2893_p6, %p2892_p7 }
  0x96   : > { %2547 = vmatpush3.bf16.msra.mxu0 %v2768_v37  ;;  %p2895_p13 = pnand %p2894_p9, %p2888_p11 }
  0x97   : > { %2548 = vmatprep.subr.bf16.mxu0 %v2769_v40 }
  0x98   : > { %817 = vmatmul.mubr.bf16.gmra.mxu0 %v484_v60  ;;  %v524_v60 = vunpack.c.h.s8.bf16 %v464_v52 }
  0x99   : > { %978 = vmatmul.mubr.bf16.gmra.mxu1 %v486_v61  ;;  %824 = vmatprep.mubr.bf16.mxu0 %v489_v62  ;;  %v526_v61 = vunpack.c.h.s8.bf16 %v466_v53  ;;  %v529_v62 = vunpack.c.l.s8.bf16 %v469_v58 }
  0x9a   : > { %985 = vmatprep.mubr.bf16.mxu1 %v491_v63  ;;  %2549 = vmatpush3.bf16.msra.mxu0 %v2769_v40  ;;  %v531_v63 = vunpack.c.l.s8.bf16 %v471_v59 }
  0x9b   : > { %2550 = vmatprep.subr.bf16.mxu0 %v2770_v45 }
  0x9e   : > { %2551 = vmatpush3.bf16.msra.mxu0 %v2770_v45 }
  0xa0   : > { %825 = vmatmul.mubr.bf16.gmra.mxu0 %v488_v2  ;;  %v528_v2 = vunpack.c.l.s8.bf16 %v468_v0 }
  0xa1   : > { %986 = vmatmul.mubr.bf16.gmra.mxu1 %v490_v3  ;;  %832 = vmatprep.mubr.bf16.mxu0 %v493_v4  ;;  %v530_v3 = vunpack.c.l.s8.bf16 %v470_v1  ;;  %v533_v4 = vunpack.c.h.s8.bf16 %v469_v58 }
  0xa2   : > { %993 = vmatprep.mubr.bf16.mxu1 %v495_v5  ;;  %v535_v5 = vunpack.c.h.s8.bf16 %v471_v59 }
  0xa8   : > { %833 = vmatmul.mubr.bf16.gmra.mxu0 %v492_v8 }
  0xa9   : > { %994 = vmatmul.mubr.bf16.gmra.mxu1 %v494_v9  ;;  %840 = vmatprep.mubr.bf16.mxu0 %v497_v10 }
  0xaa   : > { %1001 = vmatprep.mubr.bf16.mxu1 %v499_v11 }
  0xb0   : > { %841 = vmatmul.mubr.bf16.gmra.mxu0 %v496_v14 }
  0xb1   : > { %1002 = vmatmul.mubr.bf16.gmra.mxu1 %v498_v15  ;;  %848 = vmatprep.mubr.bf16.mxu0 %v501_v16  ;;  %v2771_v16 = vld [vmem:[#allocation9 + $0x38] sm:$0xff]  }
  0xb2   : > { %1009 = vmatprep.mubr.bf16.mxu1 %v503_v17  ;;  %v2772_v17 = vld [vmem:[#allocation9 + $0x30] sm:$0xff]   ;;  %2584 = vmatprep.subr.bf16.mxu1 %v2771_v16 }
  0xb3   : > { %2585 = vmatpush3.bf16.msra.mxu1 %v2771_v16 }
  0xb4   : > { %2586 = vmatprep.subr.bf16.mxu1 %v2772_v17 }
  0xb7   : > { %2587 = vmatpush3.bf16.msra.mxu1 %v2772_v17 }
  0xb8   : > { %849 = vmatmul.mubr.bf16.gmra.mxu0 %v500_v20 }
  0xb9   : > { %1010 = vmatmul.mubr.bf16.gmra.mxu1 %v502_v21  ;;  %856 = vmatprep.mubr.bf16.mxu0 %v505_v22 }
  0xba   : > { %1017 = vmatprep.mubr.bf16.mxu1 %v507_v23 }
  0xc0   : > { %857 = vmatmul.mubr.bf16.gmra.mxu0 %v504_v26  ;;  %v2773_v26 = vld [vmem:[#allocation9 + $0x28] sm:$0xff]  }
  0xc1   : > { %1018 = vmatmul.mubr.bf16.gmra.mxu1 %v506_v27  ;;  %864 = vmatprep.mubr.bf16.mxu0 %v509_v28 }
  0xc2   : > { %1025 = vmatprep.mubr.bf16.mxu1 %v511_v29  ;;  %2588 = vmatprep.subr.bf16.mxu1 %v2773_v26 }
  0xc3   : > { %2589 = vmatpush3.bf16.msra.mxu1 %v2773_v26 }
  0xc8   : > { %865 = vmatmul.mubr.bf16.gmra.mxu0 %v508_v33 }
  0xc9   : > { %1026 = vmatmul.mubr.bf16.gmra.mxu1 %v510_v34  ;;  %872 = vmatprep.mubr.bf16.mxu0 %v513_v35  ;;  %v2774_v34 = vld [vmem:[#allocation9 + $0x20] sm:$0xff]  }
  0xca   : > { %1033 = vmatprep.mubr.bf16.mxu1 %v515_v36  ;;  %2590 = vmatprep.subr.bf16.mxu1 %v2774_v34 }
  0xcb   : > { %2591 = vmatpush3.bf16.msra.mxu1 %v2774_v34 }
  0xd0   : > { %873 = vmatmul.mubr.bf16.gmra.mxu0 %v512_v41 }
  0xd1   : > { %1034 = vmatmul.mubr.bf16.gmra.mxu1 %v514_v42  ;;  %880 = vmatprep.mubr.bf16.mxu0 %v517_v43  ;;  %v2775_v43 = vld [vmem:[#allocation9 + $0x18] sm:$0xff]  }
  0xd2   : > { %1041 = vmatprep.mubr.bf16.mxu1 %v519_v44  ;;  %2592 = vmatprep.subr.bf16.mxu1 %v2775_v43 }
  0xd3   : > { %2593 = vmatpush3.bf16.msra.mxu1 %v2775_v43 }
  0xd8   : > { %881 = vmatmul.mubr.bf16.gmra.mxu0 %v516_v48 }
  0xd9   : > { %1042 = vmatmul.mubr.bf16.gmra.mxu1 %v518_v49  ;;  %888 = vmatprep.mubr.bf16.mxu0 %v521_v50 }
  0xda   : > { %1049 = vmatprep.mubr.bf16.mxu1 %v523_v51 }
  0xe0   : > { %889 = vmatmul.mubr.bf16.gmra.mxu0 %v520_v54 }
  0xe1   : > { %1050 = vmatmul.mubr.bf16.gmra.mxu1 %v522_v55  ;;  %896 = vmatprep.mubr.bf16.mxu0 %v525_v56 }
  0xe2   : > { %1057 = vmatprep.mubr.bf16.mxu1 %v527_v57 }
  0xe8   : > { %897 = vmatmul.mubr.bf16.gmra.mxu0 %v524_v60 }
  0xe9   : > { %1058 = vmatmul.mubr.bf16.gmra.mxu1 %v526_v61  ;;  %904 = vmatprep.mubr.bf16.mxu0 %v529_v62 }
  0xea   : > { %1065 = vmatprep.mubr.bf16.mxu1 %v531_v63 }
  0xf0   : > { %905 = vmatmul.mubr.bf16.gmra.mxu0 %v528_v2 }
  0xf1   : > { %1066 = vmatmul.mubr.bf16.gmra.mxu1 %v530_v3  ;;  %912 = vmatprep.mubr.bf16.mxu0 %v533_v4 }
  0xf2   : > { %1073 = vmatprep.mubr.bf16.mxu1 %v535_v5 }
  0xf8   : > { %913 = vmatmul.mubr.bf16.gmra.mxu0 %v532_v6 }
  0xf9   : > { %1074 = vmatmul.mubr.bf16.gmra.mxu1 %v534_v7 }
 0x140   : > { %v2280_v8 = vpop.f32.mrf.mxu0 }
 0x141   : > { %v2392_v9 = vpop.f32.mrf.mxu1 }
 0x142   : > { %v2281_v10 = vpop.f32.mrf.mxu0 }
 0x143   : > { %v2393_v11 = vpop.f32.mrf.mxu1  ;;  %v2282_v14 = vadd.f32 %v2281_v10, %v2280_v8 }
 0x144   : > { %v2283_v12 = vpop.f32.mrf.mxu0  ;;  %v2394_v15 = vadd.f32 %v2393_v11, %v2392_v9 }
 0x145   : > { %v2395_v13 = vpop.f32.mrf.mxu1 }
 0x146   : > { %v2284_v18 = vpop.f32.mrf.mxu0  ;;  %v956_v24 = vadd.f32 %v2394_v15, %v2282_v14 }
 0x147   : > { %v2396_v19 = vpop.f32.mrf.mxu1  ;;  %v2285_v20 = vadd.f32 %v2284_v18, %v2283_v12 }
 0x148   : > { %v2397_v21 = vadd.f32 %v2396_v19, %v2395_v13  ;;  %v2286_v22 = vpop.f32.mrf.mxu0 }
 0x149   : > { %v2398_v23 = vpop.f32.mrf.mxu1 }
 0x14a   : > { %v959_v25 = vadd.f32 %v2397_v21, %v2285_v20  ;;  %v2287_v27 = vpop.f32.mrf.mxu0 }
 0x14b   : > { %v2399_v28 = vpop.f32.mrf.mxu1  ;;  %v2288_v32 = vadd.f32 %v2287_v27, %v2286_v22 }
 0x14c   : > { %v1181_v29 = vpack.c.bf16 %v959_v25, %v956_v24  ;;  %v2289_v30 = vpop.f32.mrf.mxu0  ;;  %v2400_v33 = vadd.f32 %v2399_v28, %v2398_v23 }
 0x14d   : > { %v2401_v31 = vpop.f32.mrf.mxu1 }
 0x14e   : > { %2552 = vmatprep.mubr.bf16.mxu0 %v1181_v29  ;;  %v2290_v35 = vpop.f32.mrf.mxu0  ;;  %v964_v41 = vadd.f32 %v2400_v33, %v2288_v32 }
 0x14f   : > { %v2402_v36 = vpop.f32.mrf.mxu1  ;;  %v2291_v37 = vadd.f32 %v2290_v35, %v2289_v30 }
 0x150   : > { %v2403_v38 = vadd.f32 %v2402_v36, %v2401_v31  ;;  %v2292_v39 = vpop.f32.mrf.mxu0 }
 0x151   : > { %v2404_v40 = vpop.f32.mrf.mxu1 }
 0x152   : > { %v967_v42 = vadd.f32 %v2403_v38, %v2291_v37  ;;  %v2293_v44 = vpop.f32.mrf.mxu0 }
 0x153   : > { %v2405_v45 = vpop.f32.mrf.mxu1  ;;  %v2294_v49 = vadd.f32 %v2293_v44, %v2292_v39 }
 0x154   : > { %v1182_v46 = vpack.c.bf16 %v967_v42, %v964_v41  ;;  %v2295_v47 = vpop.f32.mrf.mxu0  ;;  %v2406_v50 = vadd.f32 %v2405_v45, %v2404_v40 }
 0x155   : > { %v2407_v48 = vpop.f32.mrf.mxu1 }
 0x156   : > { %2553 = vmatmul.mubr.bf16.vlgmr.msra.gmra.mxu0 %v1182_v46  ;;  %v2296_v51 = vpop.f32.mrf.mxu0  ;;  %v972_v57 = vadd.f32 %v2406_v50, %v2294_v49 }
 0x157   : > { %v2408_v52 = vpop.f32.mrf.mxu1  ;;  %v2297_v53 = vadd.f32 %v2296_v51, %v2295_v47 }
 0x158   : > { %v2409_v54 = vadd.f32 %v2408_v52, %v2407_v48  ;;  %v2298_v55 = vpop.f32.mrf.mxu0 }
 0x159   : > { %v2410_v56 = vpop.f32.mrf.mxu1 }
 0x15a   : > { %v975_v58 = vadd.f32 %v2409_v54, %v2297_v53  ;;  %v2299_v59 = vpop.f32.mrf.mxu0 }
 0x15b   : > { %v2411_v60 = vpop.f32.mrf.mxu1  ;;  %v2300_v0 = vadd.f32 %v2299_v59, %v2298_v55 }
 0x15c   : > { %v1183_v61 = vpack.c.bf16 %v975_v58, %v972_v57  ;;  %v2301_v62 = vpop.f32.mrf.mxu0  ;;  %v2412_v1 = vadd.f32 %v2411_v60, %v2410_v56 }
 0x15d   : > { %v2413_v63 = vpop.f32.mrf.mxu1 }
 0x15e   : > { %2556 = vmatprep.mubr.bf16.mxu0 %v1183_v61  ;;  %v2302_v2 = vpop.f32.mrf.mxu0  ;;  %v980_v8 = vadd.f32 %v2412_v1, %v2300_v0 }
 0x15f   : > { %v2414_v3 = vpop.f32.mrf.mxu1  ;;  %v2303_v4 = vadd.f32 %v2302_v2, %v2301_v62 }
 0x160   : > { %v2415_v5 = vadd.f32 %v2414_v3, %v2413_v63  ;;  %v2304_v6 = vpop.f32.mrf.mxu0 }
 0x161   : > { %v2416_v7 = vpop.f32.mrf.mxu1 }
 0x162   : > { %v983_v9 = vadd.f32 %v2415_v5, %v2303_v4  ;;  %v2305_v10 = vpop.f32.mrf.mxu0 }
 0x163   : > { %v2417_v11 = vpop.f32.mrf.mxu1  ;;  %v2306_v15 = vadd.f32 %v2305_v10, %v2304_v6 }
 0x164   : > { %v1184_v12 = vpack.c.bf16 %v983_v9, %v980_v8  ;;  %v2307_v13 = vpop.f32.mrf.mxu0  ;;  %v2418_v16 = vadd.f32 %v2417_v11, %v2416_v7 }
 0x165   : > { %v2419_v14 = vpop.f32.mrf.mxu1 }
 0x166   : > { %2557 = vmatmul.mubr.bf16.gmra.mxu0 %v1184_v12  ;;  %v2308_v17 = vpop.f32.mrf.mxu0  ;;  %v988_v23 = vadd.f32 %v2418_v16, %v2306_v15 }
 0x167   : > { %v2420_v18 = vpop.f32.mrf.mxu1  ;;  %v2309_v19 = vadd.f32 %v2308_v17, %v2307_v13 }
 0x168   : > { %v2421_v20 = vadd.f32 %v2420_v18, %v2419_v14  ;;  %v2310_v21 = vpop.f32.mrf.mxu0 }
 0x169   : > { %v2422_v22 = vpop.f32.mrf.mxu1 }
 0x16a   : > { %v991_v24 = vadd.f32 %v2421_v20, %v2309_v19  ;;  %v2311_v25 = vpop.f32.mrf.mxu0 }
 0x16b   : > { %v2423_v26 = vpop.f32.mrf.mxu1  ;;  %v2312_v30 = vadd.f32 %v2311_v25, %v2310_v21 }
 0x16c   : > { %v1185_v27 = vpack.c.bf16 %v991_v24, %v988_v23  ;;  %v2313_v28 = vpop.f32.mrf.mxu0  ;;  %v2424_v31 = vadd.f32 %v2423_v26, %v2422_v22 }
 0x16d   : > { %v2425_v29 = vpop.f32.mrf.mxu1 }
 0x16e   : > { %2560 = vmatprep.mubr.bf16.mxu0 %v1185_v27  ;;  %v2314_v32 = vpop.f32.mrf.mxu0  ;;  %v996_v38 = vadd.f32 %v2424_v31, %v2312_v30 }
 0x16f   : > { %v2426_v33 = vpop.f32.mrf.mxu1  ;;  %v2315_v34 = vadd.f32 %v2314_v32, %v2313_v28 }
 0x170   : > { %v2427_v35 = vadd.f32 %v2426_v33, %v2425_v29  ;;  %v2316_v36 = vpop.f32.mrf.mxu0 }
 0x171   : > { %v2428_v37 = vpop.f32.mrf.mxu1 }
 0x172   : > { %v999_v39 = vadd.f32 %v2427_v35, %v2315_v34  ;;  %v2317_v40 = vpop.f32.mrf.mxu0 }
 0x173   : > { %v2429_v41 = vpop.f32.mrf.mxu1  ;;  %v2318_v45 = vadd.f32 %v2317_v40, %v2316_v36 }
 0x174   : > { %v1186_v42 = vpack.c.bf16 %v999_v39, %v996_v38  ;;  %v2319_v43 = vpop.f32.mrf.mxu0  ;;  %v2430_v46 = vadd.f32 %v2429_v41, %v2428_v37 }
 0x175   : > { %v2431_v44 = vpop.f32.mrf.mxu1 }
 0x176   : > { %2561 = vmatmul.mubr.bf16.gmra.mxu0 %v1186_v42  ;;  %v2320_v47 = vpop.f32.mrf.mxu0  ;;  %v1004_v53 = vadd.f32 %v2430_v46, %v2318_v45 }
 0x177   : > { %v2432_v48 = vpop.f32.mrf.mxu1  ;;  %v2321_v49 = vadd.f32 %v2320_v47, %v2319_v43  ;;  %v2776_v43 = vld [vmem:[#allocation9 + $0x10] sm:$0xff]  }
 0x178   : > { %v2433_v50 = vadd.f32 %v2432_v48, %v2431_v44  ;;  %v2322_v51 = vpop.f32.mrf.mxu0  ;;  %2594 = vmatprep.subr.bf16.mxu1 %v2776_v43 }
 0x179   : > { %v2434_v52 = vpop.f32.mrf.mxu1  ;;  %2595 = vmatpush3.bf16.msra.mxu1 %v2776_v43 }
 0x17a   : > { %v1007_v54 = vadd.f32 %v2433_v50, %v2321_v49  ;;  %v2323_v55 = vpop.f32.mrf.mxu0 }
 0x17b   : > { %v2435_v56 = vpop.f32.mrf.mxu1  ;;  %v2324_v60 = vadd.f32 %v2323_v55, %v2322_v51 }
 0x17c   : > { %v1187_v57 = vpack.c.bf16 %v1007_v54, %v1004_v53  ;;  %v2325_v58 = vpop.f32.mrf.mxu0  ;;  %v2436_v61 = vadd.f32 %v2435_v56, %v2434_v52  ;;  %v2777_v52 = vld [vmem:[#allocation9 + $0x8] sm:$0xff]  }
 0x17d   : > { %v2437_v59 = vpop.f32.mrf.mxu1  ;;  %2596 = vmatprep.subr.bf16.mxu1 %v2777_v52 }
 0x17e   : > { %2564 = vmatprep.mubr.bf16.mxu0 %v1187_v57  ;;  %v2326_v62 = vpop.f32.mrf.mxu0  ;;  %v1012_v4 = vadd.f32 %v2436_v61, %v2324_v60  ;;  %2597 = vmatpush3.bf16.msra.mxu1 %v2777_v52  ;;  %v2778_v60 = vld [vmem:[#allocation9] sm:$0xff]  }
 0x17f   : > { %v2438_v63 = vpop.f32.mrf.mxu1  ;;  %v2327_v0 = vadd.f32 %v2326_v62, %v2325_v58  ;;  %2598 = vmatprep.subr.bf16.mxu1 %v2778_v60 }
 0x180   : > { %v2439_v1 = vadd.f32 %v2438_v63, %v2437_v59  ;;  %v2328_v2 = vpop.f32.mrf.mxu0 }
 0x181   : > { %v2440_v3 = vpop.f32.mrf.mxu1 }
 0x182   : > { %v1015_v5 = vadd.f32 %v2439_v1, %v2327_v0  ;;  %v2329_v6 = vpop.f32.mrf.mxu0  ;;  %2599 = vmatpush3.bf16.msra.mxu1 %v2778_v60 }
 0x183   : > { %v2441_v7 = vpop.f32.mrf.mxu1  ;;  %v2330_v11 = vadd.f32 %v2329_v6, %v2328_v2 }
 0x184   : > { %v1188_v8 = vpack.c.bf16 %v1015_v5, %v1012_v4  ;;  %v2331_v9 = vpop.f32.mrf.mxu0  ;;  %v2442_v12 = vadd.f32 %v2441_v7, %v2440_v3 }
 0x185   : > { %v2443_v10 = vpop.f32.mrf.mxu1 }
 0x186   : > { %2565 = vmatmul.mubr.bf16.gmra.mxu0 %v1188_v8  ;;  %v2332_v13 = vpop.f32.mrf.mxu0  ;;  %v1020_v19 = vadd.f32 %v2442_v12, %v2330_v11 }
 0x187   : > { %v2444_v14 = vpop.f32.mrf.mxu1  ;;  %v2333_v15 = vadd.f32 %v2332_v13, %v2331_v9 }
 0x188   : > { %v2445_v16 = vadd.f32 %v2444_v14, %v2443_v10  ;;  %v2334_v17 = vpop.f32.mrf.mxu0 }
 0x189   : > { %v2446_v18 = vpop.f32.mrf.mxu1 }
 0x18a   : > { %v1023_v20 = vadd.f32 %v2445_v16, %v2333_v15  ;;  %v2335_v21 = vpop.f32.mrf.mxu0 }
 0x18b   : > { %v2447_v22 = vpop.f32.mrf.mxu1  ;;  %v2336_v26 = vadd.f32 %v2335_v21, %v2334_v17 }
 0x18c   : > { %v1189_v23 = vpack.c.bf16 %v1023_v20, %v1020_v19  ;;  %v2337_v24 = vpop.f32.mrf.mxu0  ;;  %v2448_v27 = vadd.f32 %v2447_v22, %v2446_v18 }
 0x18d   : > { %v2449_v25 = vpop.f32.mrf.mxu1 }
 0x18e   : > { %2568 = vmatprep.mubr.bf16.mxu0 %v1189_v23  ;;  %v2338_v28 = vpop.f32.mrf.mxu0  ;;  %v1028_v34 = vadd.f32 %v2448_v27, %v2336_v26 }
 0x18f   : > { %v2450_v29 = vpop.f32.mrf.mxu1  ;;  %v2339_v30 = vadd.f32 %v2338_v28, %v2337_v24 }
 0x190   : > { %v2451_v31 = vadd.f32 %v2450_v29, %v2449_v25  ;;  %v2340_v32 = vpop.f32.mrf.mxu0 }
 0x191   : > { %v2452_v33 = vpop.f32.mrf.mxu1 }
 0x192   : > { %v1031_v35 = vadd.f32 %v2451_v31, %v2339_v30  ;;  %v2341_v36 = vpop.f32.mrf.mxu0 }
 0x193   : > { %v2453_v37 = vpop.f32.mrf.mxu1  ;;  %v2342_v41 = vadd.f32 %v2341_v36, %v2340_v32 }
 0x194   : > { %v1190_v38 = vpack.c.bf16 %v1031_v35, %v1028_v34  ;;  %v2343_v39 = vpop.f32.mrf.mxu0  ;;  %v2454_v42 = vadd.f32 %v2453_v37, %v2452_v33 }
 0x195   : > { %v2455_v40 = vpop.f32.mrf.mxu1 }
 0x196   : > { %2569 = vmatmul.mubr.bf16.gmra.mxu0 %v1190_v38  ;;  %v2344_v44 = vpop.f32.mrf.mxu0  ;;  %v1036_v50 = vadd.f32 %v2454_v42, %v2342_v41 }
 0x197   : > { %v2456_v45 = vpop.f32.mrf.mxu1  ;;  %v2345_v46 = vadd.f32 %v2344_v44, %v2343_v39 }
 0x198   : > { %v2457_v47 = vadd.f32 %v2456_v45, %v2455_v40  ;;  %v2346_v48 = vpop.f32.mrf.mxu0 }
 0x199   : > { %v2458_v49 = vpop.f32.mrf.mxu1 }
 0x19a   : > { %v1039_v51 = vadd.f32 %v2457_v47, %v2345_v46  ;;  %v2347_v53 = vpop.f32.mrf.mxu0 }
 0x19b   : > { %v2459_v54 = vpop.f32.mrf.mxu1  ;;  %v2348_v58 = vadd.f32 %v2347_v53, %v2346_v48 }
 0x19c   : > { %v1191_v55 = vpack.c.bf16 %v1039_v51, %v1036_v50  ;;  %v2349_v56 = vpop.f32.mrf.mxu0  ;;  %v2460_v59 = vadd.f32 %v2459_v54, %v2458_v49 }
 0x19d   : > { %v2461_v57 = vpop.f32.mrf.mxu1 }
 0x19e   : > { %2572 = vmatprep.mubr.bf16.mxu0 %v1191_v55  ;;  %v2350_v61 = vpop.f32.mrf.mxu0  ;;  %v1044_v3 = vadd.f32 %v2460_v59, %v2348_v58 }
 0x19f   : > { %v2462_v62 = vpop.f32.mrf.mxu1  ;;  %v2351_v63 = vadd.f32 %v2350_v61, %v2349_v56 }
 0x1a0   : > { %v2463_v0 = vadd.f32 %v2462_v62, %v2461_v57  ;;  %v2352_v1 = vpop.f32.mrf.mxu0 }
 0x1a1   : > { %v2464_v2 = vpop.f32.mrf.mxu1 }
 0x1a2   : > { %v1047_v4 = vadd.f32 %v2463_v0, %v2351_v63  ;;  %v2353_v5 = vpop.f32.mrf.mxu0 }
 0x1a3   : > { %v2465_v6 = vpop.f32.mrf.mxu1  ;;  %v2354_v10 = vadd.f32 %v2353_v5, %v2352_v1 }
 0x1a4   : > { %v1192_v7 = vpack.c.bf16 %v1047_v4, %v1044_v3  ;;  %v2355_v8 = vpop.f32.mrf.mxu0  ;;  %v2466_v11 = vadd.f32 %v2465_v6, %v2464_v2  ;;  %v3204_v2 = vld [vmem:[%s3352_s3] ss:$0 sm:$0xff] }
 0x1a5   : > { %v2467_v9 = vpop.f32.mrf.mxu1 }
 0x1a6   : > { %2573 = vmatmul.mubr.bf16.gmra.mxu0 %v1192_v7  ;;  %v2356_v12 = vpop.f32.mrf.mxu0  ;;  %v1052_v18 = vadd.f32 %v2466_v11, %v2354_v10 }
 0x1a7   : > { %v2468_v13 = vpop.f32.mrf.mxu1  ;;  %v2357_v14 = vadd.f32 %v2356_v12, %v2355_v8 }
 0x1a8   : > { %v2469_v15 = vadd.f32 %v2468_v13, %v2467_v9  ;;  %v2358_v16 = vpop.f32.mrf.mxu0 }
 0x1a9   : > { %v2470_v17 = vpop.f32.mrf.mxu1 }
 0x1aa   : > { %v1055_v19 = vadd.f32 %v2469_v15, %v2357_v14  ;;  %v2359_v20 = vpop.f32.mrf.mxu0 }
 0x1ab   : > { %v2471_v21 = vpop.f32.mrf.mxu1  ;;  %v2360_v25 = vadd.f32 %v2359_v20, %v2358_v16 }
 0x1ac   : > { %v1193_v22 = vpack.c.bf16 %v1055_v19, %v1052_v18  ;;  %v2361_v23 = vpop.f32.mrf.mxu0  ;;  %v2472_v26 = vadd.f32 %v2471_v21, %v2470_v17 }
 0x1ad   : > { %v2473_v24 = vpop.f32.mrf.mxu1 }
 0x1ae   : > { %2576 = vmatprep.mubr.bf16.mxu0 %v1193_v22  ;;  %v2362_v27 = vpop.f32.mrf.mxu0  ;;  %v1060_v33 = vadd.f32 %v2472_v26, %v2360_v25 }
 0x1af   : > { %v2474_v28 = vpop.f32.mrf.mxu1  ;;  %v2363_v29 = vadd.f32 %v2362_v27, %v2361_v23 }
 0x1b0   : > { %v2475_v30 = vadd.f32 %v2474_v28, %v2473_v24  ;;  %v2364_v31 = vpop.f32.mrf.mxu0 }
 0x1b1   : > { %v2476_v32 = vpop.f32.mrf.mxu1 }
 0x1b2   : > { %v1063_v34 = vadd.f32 %v2475_v30, %v2363_v29  ;;  %v2365_v35 = vpop.f32.mrf.mxu0 }
 0x1b3   : > { %v2477_v36 = vpop.f32.mrf.mxu1  ;;  %v2366_v40 = vadd.f32 %v2365_v35, %v2364_v31 }
 0x1b4   : > { %v1194_v37 = vpack.c.bf16 %v1063_v34, %v1060_v33  ;;  %v2367_v38 = vpop.f32.mrf.mxu0  ;;  %v2478_v41 = vadd.f32 %v2477_v36, %v2476_v32 }
 0x1b5   : > { %v2479_v39 = vpop.f32.mrf.mxu1 }
 0x1b6   : > { %2577 = vmatmul.mubr.bf16.gmra.mxu0 %v1194_v37  ;;  %v2368_v42 = vpop.f32.mrf.mxu0  ;;  %v1068_v48 = vadd.f32 %v2478_v41, %v2366_v40 }
 0x1b7   : > { %v2480_v43 = vpop.f32.mrf.mxu1  ;;  %v2369_v44 = vadd.f32 %v2368_v42, %v2367_v38 }
 0x1b8   : > { %v2481_v45 = vadd.f32 %v2480_v43, %v2479_v39  ;;  %v2370_v46 = vpop.f32.mrf.mxu0 }
 0x1b9   : > { %v2482_v47 = vpop.f32.mrf.mxu1 }
 0x1ba   : > { %v1071_v49 = vadd.f32 %v2481_v45, %v2369_v44  ;;  %v2371_v50 = vpop.f32.mrf.mxu0 }
 0x1bb   : > { %v2483_v51 = vpop.f32.mrf.mxu1  ;;  %v2372_v55 = vadd.f32 %v2371_v50, %v2370_v46 }
 0x1bc   : > { %v1195_v52 = vpack.c.bf16 %v1071_v49, %v1068_v48  ;;  %v2373_v53 = vpop.f32.mrf.mxu0  ;;  %v2484_v56 = vadd.f32 %v2483_v51, %v2482_v47 }
 0x1bd   : > { %v2485_v54 = vpop.f32.mrf.mxu1 }
 0x1be   : > { %2580 = vmatprep.mubr.bf16.mxu0 %v1195_v52  ;;  %v2374_v57 = vpop.f32.mrf.mxu0  ;;  %v1076_v61 = vadd.f32 %v2484_v56, %v2372_v55 }
 0x1bf   : > { %v2486_v58 = vpop.f32.mrf.mxu1  ;;  %v2375_v59 = vadd.f32 %v2374_v57, %v2373_v53 }
 0x1c0   : > { %v2487_v60 = vadd.f32 %v2486_v58, %v2485_v54 }
 0x1c2   : > { %v1079_v62 = vadd.f32 %v2487_v60, %v2375_v59 }
 0x1c4   : > { %v1196_v63 = vpack.c.bf16 %v1079_v62, %v1076_v61 }
 0x1c6   : > { %2581 = vmatmul.mubr.bf16.gmra.mxu0 %v1196_v63 }
 0x216   : > { %v2554_v0 = vpop.f32.mrf.mxu0 }
 0x217   : > { %v1311_v6 = vadd.f32 %v2554_v0, %v3204_v2 }
 0x218   : > { %v1302_v1 = vpop.f32.mrf.mxu0 }
 0x219   : > { %v1303_v4 = vadd.f32 %v3204_v2, %v1302_v1  ;;  %v1431_v12 = vmax.f32 %v1311_v6, 0.0 }
 0x21a   : > { %v2555_v3 = vpop.f32.mrf.mxu0 }
 0x21b   : > { %v1314_v5 = vadd.f32 %v2555_v3, %v3204_v2  ;;  %v1429_v10 = vmax.f32 %v1303_v4, 0.0 }
 0x21c   : > { %v1305_v7 = vpop.f32.mrf.mxu0 }
 0x21d   : > { %v1306_v8 = vadd.f32 %v3204_v2, %v1305_v7  ;;  %v1432_v9 = vmax.f32 %v1314_v5, 0.0 }
 0x21f   : > { %v1430_v11 = vmax.f32 %v1306_v8, 0.0  ;;  %v1462_v14 = vpack.c.bf16 %v1432_v9, %v1431_v12 }
 0x221   : > { %v1461_v13 = vpack.c.bf16 %v1430_v11, %v1429_v10 }
 0x223   : > { %2600 = vmatprep.mubr.bf16.mxu1 %v1461_v13 }
 0x224   : > { %2601 = vmatmul.mubr.bf16.vlgmr.msra.gmra.mxu1 %v1462_v14 }
 0x226   : > { %v2558_v15 = vpop.f32.mrf.mxu0 }
 0x227   : > { %v1327_v20 = vadd.f32 %v2558_v15, %v3204_v2 }
 0x228   : > { %v1318_v16 = vpop.f32.mrf.mxu0 }
 0x229   : > { %v1319_v18 = vadd.f32 %v3204_v2, %v1318_v16  ;;  %v1435_v26 = vmax.f32 %v1327_v20, 0.0 }
 0x22a   : > { %v2559_v17 = vpop.f32.mrf.mxu0 }
 0x22b   : > { %v1330_v19 = vadd.f32 %v2559_v17, %v3204_v2  ;;  %v1433_v24 = vmax.f32 %v1319_v18, 0.0 }
 0x22c   : > { %v1321_v21 = vpop.f32.mrf.mxu0 }
 0x22d   : > { %v1322_v22 = vadd.f32 %v3204_v2, %v1321_v21  ;;  %v1436_v23 = vmax.f32 %v1330_v19, 0.0 }
 0x22f   : > { %v1434_v25 = vmax.f32 %v1322_v22, 0.0  ;;  %v1464_v28 = vpack.c.bf16 %v1436_v23, %v1435_v26 }
 0x231   : > { %v1463_v27 = vpack.c.bf16 %v1434_v25, %v1433_v24 }
 0x233   : > { %2604 = vmatprep.mubr.bf16.mxu1 %v1463_v27 }
 0x234   : > { %2605 = vmatmul.mubr.bf16.gmra.mxu1 %v1464_v28 }
 0x236   : > { %v2562_v29 = vpop.f32.mrf.mxu0 }
 0x237   : > { %v1343_v34 = vadd.f32 %v2562_v29, %v3204_v2 }
 0x238   : > { %v1334_v30 = vpop.f32.mrf.mxu0 }
 0x239   : > { %v1335_v32 = vadd.f32 %v3204_v2, %v1334_v30  ;;  %v1439_v40 = vmax.f32 %v1343_v34, 0.0 }
 0x23a   : > { %v2563_v31 = vpop.f32.mrf.mxu0 }
 0x23b   : > { %v1346_v33 = vadd.f32 %v2563_v31, %v3204_v2  ;;  %v1437_v38 = vmax.f32 %v1335_v32, 0.0 }
 0x23c   : > { %v1337_v35 = vpop.f32.mrf.mxu0 }
 0x23d   : > { %v1338_v36 = vadd.f32 %v3204_v2, %v1337_v35  ;;  %v1440_v37 = vmax.f32 %v1346_v33, 0.0 }
 0x23f   : > { %v1438_v39 = vmax.f32 %v1338_v36, 0.0  ;;  %v1466_v42 = vpack.c.bf16 %v1440_v37, %v1439_v40 }
 0x241   : > { %v1465_v41 = vpack.c.bf16 %v1438_v39, %v1437_v38 }
 0x243   : > { %2608 = vmatprep.mubr.bf16.mxu1 %v1465_v41 }
 0x244   : > { %2609 = vmatmul.mubr.bf16.gmra.mxu1 %v1466_v42 }
 0x246   : > { %v2566_v43 = vpop.f32.mrf.mxu0 }
 0x247   : > { %v1359_v48 = vadd.f32 %v2566_v43, %v3204_v2 }
 0x248   : > { %v1350_v44 = vpop.f32.mrf.mxu0 }
 0x249   : > { %v1351_v46 = vadd.f32 %v3204_v2, %v1350_v44  ;;  %v1443_v54 = vmax.f32 %v1359_v48, 0.0 }
 0x24a   : > { %v2567_v45 = vpop.f32.mrf.mxu0 }
 0x24b   : > { %v1362_v47 = vadd.f32 %v2567_v45, %v3204_v2  ;;  %v1441_v52 = vmax.f32 %v1351_v46, 0.0 }
 0x24c   : > { %v1353_v49 = vpop.f32.mrf.mxu0 }
 0x24d   : > { %v1354_v50 = vadd.f32 %v3204_v2, %v1353_v49  ;;  %v1444_v51 = vmax.f32 %v1362_v47, 0.0 }
 0x24f   : > { %v1442_v53 = vmax.f32 %v1354_v50, 0.0  ;;  %v1468_v56 = vpack.c.bf16 %v1444_v51, %v1443_v54  ;;  %v3241_v51 = vld [vmem:[%s3354_s5] ss:$0 sm:$0xff] }
 0x251   : > { %v1467_v55 = vpack.c.bf16 %v1442_v53, %v1441_v52 }
 0x253   : > { %2612 = vmatprep.mubr.bf16.mxu1 %v1467_v55 }
 0x254   : > { %2613 = vmatmul.mubr.bf16.gmra.mxu1 %v1468_v56 }
 0x256   : > { %v2570_v57 = vpop.f32.mrf.mxu0 }
 0x257   : > { %v1375_v62 = vadd.f32 %v2570_v57, %v3204_v2 }
 0x258   : > { %v1366_v58 = vpop.f32.mrf.mxu0 }
 0x259   : > { %v1367_v60 = vadd.f32 %v3204_v2, %v1366_v58  ;;  %v1447_v5 = vmax.f32 %v1375_v62, 0.0 }
 0x25a   : > { %v2571_v59 = vpop.f32.mrf.mxu0 }
 0x25b   : > { %v1378_v61 = vadd.f32 %v2571_v59, %v3204_v2  ;;  %v1445_v3 = vmax.f32 %v1367_v60, 0.0 }
 0x25c   : > { %v1369_v63 = vpop.f32.mrf.mxu0 }
 0x25d   : > { %v1370_v0 = vadd.f32 %v3204_v2, %v1369_v63  ;;  %v1448_v1 = vmax.f32 %v1378_v61, 0.0 }
 0x25f   : > { %v1446_v4 = vmax.f32 %v1370_v0, 0.0  ;;  %v1470_v7 = vpack.c.bf16 %v1448_v1, %v1447_v5 }
 0x261   : > { %v1469_v6 = vpack.c.bf16 %v1446_v4, %v1445_v3 }
 0x263   : > { %2616 = vmatprep.mubr.bf16.mxu1 %v1469_v6 }
 0x264   : > { %2617 = vmatmul.mubr.bf16.gmra.mxu1 %v1470_v7 }
 0x266   : > { %v2574_v8 = vpop.f32.mrf.mxu0 }
 0x267   : > { %v1391_v13 = vadd.f32 %v2574_v8, %v3204_v2 }
 0x268   : > { %v1382_v9 = vpop.f32.mrf.mxu0 }
 0x269   : > { %v1383_v11 = vadd.f32 %v3204_v2, %v1382_v9  ;;  %v1451_v19 = vmax.f32 %v1391_v13, 0.0 }
 0x26a   : > { %v2575_v10 = vpop.f32.mrf.mxu0 }
 0x26b   : > { %v1394_v12 = vadd.f32 %v2575_v10, %v3204_v2  ;;  %v1449_v17 = vmax.f32 %v1383_v11, 0.0 }
 0x26c   : > { %v1385_v14 = vpop.f32.mrf.mxu0 }
 0x26d   : > { %v1386_v15 = vadd.f32 %v3204_v2, %v1385_v14  ;;  %v1452_v16 = vmax.f32 %v1394_v12, 0.0 }
 0x26f   : > { %v1450_v18 = vmax.f32 %v1386_v15, 0.0  ;;  %v1472_v21 = vpack.c.bf16 %v1452_v16, %v1451_v19 }
 0x271   : > { %v1471_v20 = vpack.c.bf16 %v1450_v18, %v1449_v17 }
 0x273   : > { %2620 = vmatprep.mubr.bf16.mxu1 %v1471_v20 }
 0x274   : > { %2621 = vmatmul.mubr.bf16.gmra.mxu1 %v1472_v21 }
 0x276   : > { %v2578_v22 = vpop.f32.mrf.mxu0 }
 0x277   : > { %v1407_v27 = vadd.f32 %v2578_v22, %v3204_v2 }
 0x278   : > { %v1398_v23 = vpop.f32.mrf.mxu0 }
 0x279   : > { %v1399_v25 = vadd.f32 %v3204_v2, %v1398_v23  ;;  %v1455_v33 = vmax.f32 %v1407_v27, 0.0 }
 0x27a   : > { %v2579_v24 = vpop.f32.mrf.mxu0 }
 0x27b   : > { %v1410_v26 = vadd.f32 %v2579_v24, %v3204_v2  ;;  %v1453_v31 = vmax.f32 %v1399_v25, 0.0 }
 0x27c   : > { %v1401_v28 = vpop.f32.mrf.mxu0 }
 0x27d   : > { %v1402_v29 = vadd.f32 %v3204_v2, %v1401_v28  ;;  %v1456_v30 = vmax.f32 %v1410_v26, 0.0 }
 0x27f   : > { %v1454_v32 = vmax.f32 %v1402_v29, 0.0  ;;  %v1474_v35 = vpack.c.bf16 %v1456_v30, %v1455_v33 }
 0x281   : > { %v1473_v34 = vpack.c.bf16 %v1454_v32, %v1453_v31 }
 0x283   : > { %2624 = vmatprep.mubr.bf16.mxu1 %v1473_v34 }
 0x284   : > { %2625 = vmatmul.mubr.bf16.gmra.mxu1 %v1474_v35 }
 0x286   : > { %v2582_v36 = vpop.f32.mrf.mxu0 }
 0x287   : > { %v1423_v41 = vadd.f32 %v2582_v36, %v3204_v2 }
 0x288   : > { %v1414_v37 = vpop.f32.mrf.mxu0 }
 0x289   : > { %v1415_v39 = vadd.f32 %v3204_v2, %v1414_v37  ;;  %v1459_v47 = vmax.f32 %v1423_v41, 0.0 }
 0x28a   : > { %v2583_v38 = vpop.f32.mrf.mxu0 }
 0x28b   : > { %v1426_v40 = vadd.f32 %v2583_v38, %v3204_v2  ;;  %v1457_v45 = vmax.f32 %v1415_v39, 0.0 }
 0x28c   : > { %v1417_v42 = vpop.f32.mrf.mxu0 }
 0x28d   : > { %v1418_v43 = vadd.f32 %v3204_v2, %v1417_v42  ;;  %v1460_v44 = vmax.f32 %v1426_v40, 0.0 }
 0x28f   : > { %v1458_v46 = vmax.f32 %v1418_v43, 0.0  ;;  %v1476_v49 = vpack.c.bf16 %v1460_v44, %v1459_v47 }
 0x291   : > { %v1475_v48 = vpack.c.bf16 %v1458_v46, %v1457_v45 }
 0x293   : > { %2628 = vmatprep.mubr.bf16.mxu1 %v1475_v48 }
 0x294   : > { %2629 = vmatmul.mubr.bf16.gmra.mxu1 %v1476_v49 }
 0x2e4   : > { %v2602_v50 = vpop.f32.mrf.mxu1 }
 0x2e5   : > { %v1591_v53 = vadd.f32 %v2602_v50, %v3241_v51 }
 0x2e6   : > { %v1582_v52 = vpop.f32.mrf.mxu1 }
 0x2e7   : > { %v1583_v2 = vadd.f32 %v3241_v51, %v1582_v52  ;;  %v1711_v57 = vmax.f32 %v1591_v53, 0.0 }
 0x2e8   : > { %v2603_v54 = vpop.f32.mrf.mxu1 }
 0x2e9   : > { %v1594_v55 = vadd.f32 %v2603_v54, %v3241_v51  ;;  %v1709_v60 = vmax.f32 %v1583_v2, 0.0 }
 0x2ea   : > { %v1585_v56 = vpop.f32.mrf.mxu1 }
 0x2eb   : > { %v1712_v58 = vmax.f32 %v1594_v55, 0.0  ;;  %v1586_v59 = vadd.f32 %v3241_v51, %v1585_v56 }
 0x2ed   : > { %v2177_v61 = vpack.c.bf16 %v1712_v58, %v1711_v57  ;;  %v1710_v62 = vmax.f32 %v1586_v59, 0.0 }
 0x2ef   : > { %2249 = vst [vmem:[%s3248_s15 + $0x8] sm:$0xff] %v2177_v61   ;;  %v2172_v63 = vpack.c.bf16 %v1710_v62, %v1709_v60 }
 0x2f1   : > { %2173 = vst [vmem:[%s3248_s15] sm:$0xff] %v2172_v63  }
 0x2f4   : > { %v2606_v0 = vpop.f32.mrf.mxu1 }
 0x2f5   : > { %v1607_v3 = vadd.f32 %v2606_v0, %v3241_v51 }
 0x2f6   : > { %v1598_v1 = vpop.f32.mrf.mxu1 }
 0x2f7   : > { %v1599_v5 = vadd.f32 %v3241_v51, %v1598_v1  ;;  %v1715_v8 = vmax.f32 %v1607_v3, 0.0 }
 0x2f8   : > { %v2607_v4 = vpop.f32.mrf.mxu1 }
 0x2f9   : > { %v1610_v6 = vadd.f32 %v2607_v4, %v3241_v51  ;;  %v1713_v11 = vmax.f32 %v1599_v5, 0.0 }
 0x2fa   : > { %v1601_v7 = vpop.f32.mrf.mxu1 }
 0x2fb   : > { %v1716_v9 = vmax.f32 %v1610_v6, 0.0  ;;  %v1602_v10 = vadd.f32 %v3241_v51, %v1601_v7 }
 0x2fd   : > { %v2187_v12 = vpack.c.bf16 %v1716_v9, %v1715_v8  ;;  %v1714_v13 = vmax.f32 %v1602_v10, 0.0 }
 0x2ff   : > { %2251 = vst [vmem:[%s3248_s15 + $0x18] sm:$0xff] %v2187_v12   ;;  %v2182_v14 = vpack.c.bf16 %v1714_v13, %v1713_v11 }
 0x301   : > { %2250 = vst [vmem:[%s3248_s15 + $0x10] sm:$0xff] %v2182_v14  }
 0x304   : > { %v2610_v15 = vpop.f32.mrf.mxu1 }
 0x305   : > { %v1623_v17 = vadd.f32 %v2610_v15, %v3241_v51 }
 0x306   : > { %v1614_v16 = vpop.f32.mrf.mxu1 }
 0x307   : > { %v1615_v19 = vadd.f32 %v3241_v51, %v1614_v16  ;;  %v1719_v22 = vmax.f32 %v1623_v17, 0.0 }
 0x308   : > { %v2611_v18 = vpop.f32.mrf.mxu1 }
 0x309   : > { %v1626_v20 = vadd.f32 %v2611_v18, %v3241_v51  ;;  %v1717_v25 = vmax.f32 %v1615_v19, 0.0 }
 0x30a   : > { %v1617_v21 = vpop.f32.mrf.mxu1 }
 0x30b   : > { %v1720_v23 = vmax.f32 %v1626_v20, 0.0  ;;  %v1618_v24 = vadd.f32 %v3241_v51, %v1617_v21 }
 0x30d   : > { %v2197_v26 = vpack.c.bf16 %v1720_v23, %v1719_v22  ;;  %v1718_v27 = vmax.f32 %v1618_v24, 0.0 }
 0x30f   : > { %2253 = vst [vmem:[%s3248_s15 + $0x28] sm:$0xff] %v2197_v26   ;;  %v2192_v28 = vpack.c.bf16 %v1718_v27, %v1717_v25 }
 0x311   : > { %2252 = vst [vmem:[%s3248_s15 + $0x20] sm:$0xff] %v2192_v28  }
 0x314   : > { %v2614_v29 = vpop.f32.mrf.mxu1 }
 0x315   : > { %v1639_v31 = vadd.f32 %v2614_v29, %v3241_v51 }
 0x316   : > { %v1630_v30 = vpop.f32.mrf.mxu1 }
 0x317   : > { %v1631_v33 = vadd.f32 %v3241_v51, %v1630_v30  ;;  %v1723_v36 = vmax.f32 %v1639_v31, 0.0 }
 0x318   : > { %v2615_v32 = vpop.f32.mrf.mxu1 }
 0x319   : > { %v1642_v34 = vadd.f32 %v2615_v32, %v3241_v51  ;;  %v1721_v39 = vmax.f32 %v1631_v33, 0.0 }
 0x31a   : > { %v1633_v35 = vpop.f32.mrf.mxu1 }
 0x31b   : > { %v1724_v37 = vmax.f32 %v1642_v34, 0.0  ;;  %v1634_v38 = vadd.f32 %v3241_v51, %v1633_v35 }
 0x31d   : > { %v2207_v40 = vpack.c.bf16 %v1724_v37, %v1723_v36  ;;  %v1722_v41 = vmax.f32 %v1634_v38, 0.0 }
 0x31f   : > { %2255 = vst [vmem:[%s3248_s15 + $0x38] sm:$0xff] %v2207_v40   ;;  %v2202_v42 = vpack.c.bf16 %v1722_v41, %v1721_v39 }
 0x321   : > { %2254 = vst [vmem:[%s3248_s15 + $0x30] sm:$0xff] %v2202_v42  }
 0x324   : > { %v2618_v43 = vpop.f32.mrf.mxu1 }
 0x325   : > { %v1655_v45 = vadd.f32 %v2618_v43, %v3241_v51 }
 0x326   : > { %v1646_v44 = vpop.f32.mrf.mxu1 }
 0x327   : > { %v1647_v47 = vadd.f32 %v3241_v51, %v1646_v44  ;;  %v1727_v50 = vmax.f32 %v1655_v45, 0.0 }
 0x328   : > { %v2619_v46 = vpop.f32.mrf.mxu1 }
 0x329   : > { %v1658_v48 = vadd.f32 %v2619_v46, %v3241_v51  ;;  %v1725_v54 = vmax.f32 %v1647_v47, 0.0 }
 0x32a   : > { %v1649_v49 = vpop.f32.mrf.mxu1 }
 0x32b   : > { %v1728_v52 = vmax.f32 %v1658_v48, 0.0  ;;  %v1650_v53 = vadd.f32 %v3241_v51, %v1649_v49 }
 0x32d   : > { %v2217_v2 = vpack.c.bf16 %v1728_v52, %v1727_v50  ;;  %v1726_v55 = vmax.f32 %v1650_v53, 0.0 }
 0x32f   : > { %2257 = vst [vmem:[%s3248_s15 + $0x48] sm:$0xff] %v2217_v2   ;;  %v2212_v56 = vpack.c.bf16 %v1726_v55, %v1725_v54 }
 0x331   : > { %2256 = vst [vmem:[%s3248_s15 + $0x40] sm:$0xff] %v2212_v56  }
 0x334   : > { %v2622_v57 = vpop.f32.mrf.mxu1 }
 0x335   : > { %v1671_v59 = vadd.f32 %v2622_v57, %v3241_v51 }
 0x336   : > { %v1662_v58 = vpop.f32.mrf.mxu1 }
 0x337   : > { %v1663_v61 = vadd.f32 %v3241_v51, %v1662_v58  ;;  %v1731_v0 = vmax.f32 %v1671_v59, 0.0 }
 0x338   : > { %v2623_v60 = vpop.f32.mrf.mxu1 }
 0x339   : > { %v1674_v62 = vadd.f32 %v2623_v60, %v3241_v51  ;;  %v1729_v4 = vmax.f32 %v1663_v61, 0.0 }
 0x33a   : > { %v1665_v63 = vpop.f32.mrf.mxu1 }
 0x33b   : > { %v1732_v1 = vmax.f32 %v1674_v62, 0.0  ;;  %v1666_v3 = vadd.f32 %v3241_v51, %v1665_v63 }
 0x33d   : > { %v2227_v5 = vpack.c.bf16 %v1732_v1, %v1731_v0  ;;  %v1730_v6 = vmax.f32 %v1666_v3, 0.0 }
 0x33f   : > { %2259 = vst [vmem:[%s3248_s15 + $0x58] sm:$0xff] %v2227_v5   ;;  %v2222_v7 = vpack.c.bf16 %v1730_v6, %v1729_v4 }
 0x341   : > { %2258 = vst [vmem:[%s3248_s15 + $0x50] sm:$0xff] %v2222_v7  }
 0x344   : > { %v2626_v8 = vpop.f32.mrf.mxu1 }
 0x345   : > { %v1687_v10 = vadd.f32 %v2626_v8, %v3241_v51 }
 0x346   : > { %v1678_v9 = vpop.f32.mrf.mxu1 }
 0x347   : > { %v1679_v12 = vadd.f32 %v3241_v51, %v1678_v9  ;;  %v1735_v15 = vmax.f32 %v1687_v10, 0.0 }
 0x348   : > { %v2627_v11 = vpop.f32.mrf.mxu1 }
 0x349   : > { %v1690_v13 = vadd.f32 %v2627_v11, %v3241_v51  ;;  %v1733_v18 = vmax.f32 %v1679_v12, 0.0 }
 0x34a   : > { %v1681_v14 = vpop.f32.mrf.mxu1 }
 0x34b   : > { %v1736_v16 = vmax.f32 %v1690_v13, 0.0  ;;  %v1682_v17 = vadd.f32 %v3241_v51, %v1681_v14 }
 0x34d   : > { %v2237_v19 = vpack.c.bf16 %v1736_v16, %v1735_v15  ;;  %v1734_v20 = vmax.f32 %v1682_v17, 0.0 }
 0x34f   : > { %2261 = vst [vmem:[%s3248_s15 + $0x68] sm:$0xff] %v2237_v19   ;;  %v2232_v21 = vpack.c.bf16 %v1734_v20, %v1733_v18 }
 0x351   : > { %2260 = vst [vmem:[%s3248_s15 + $0x60] sm:$0xff] %v2232_v21  }
 0x354   : > { %v2630_v22 = vpop.f32.mrf.mxu1 }
 0x355   : > { %v1703_v24 = vadd.f32 %v2630_v22, %v3241_v51 }
 0x356   : > { %v1694_v23 = vpop.f32.mrf.mxu1 }
 0x357   : > { %v1695_v26 = vadd.f32 %v3241_v51, %v1694_v23  ;;  %v1739_v29 = vmax.f32 %v1703_v24, 0.0 }
 0x358   : > { %v2631_v25 = vpop.f32.mrf.mxu1 }
 0x359   : > { %v1706_v27 = vadd.f32 %v2631_v25, %v3241_v51  ;;  %v1737_v32 = vmax.f32 %v1695_v26, 0.0 }
 0x35a   : > { %v1697_v28 = vpop.f32.mrf.mxu1 }
 0x35b   : > { %v1740_v30 = vmax.f32 %v1706_v27, 0.0  ;;  %v1698_v31 = vadd.f32 %v3241_v51, %v1697_v28 }
 0x35d   : > { %v2247_v33 = vpack.c.bf16 %v1740_v30, %v1739_v29  ;;  %v1738_v34 = vmax.f32 %v1698_v31, 0.0 }
 0x35f   : > { %2263 = vst [vmem:[%s3248_s15 + $0x78] sm:$0xff] %v2247_v33   ;;  %v2242_v35 = vpack.c.bf16 %v1738_v34, %v1737_v32 }
 0x361   : > { %2262 = vst [vmem:[%s3248_s15 + $0x70] sm:$0xff] %v2242_v35  }
 0x362   : > { %2898 = shalt.err (!%p2895_p13)
}
 0x363   : > { %s2899_s1 = scalar_lea.hbm %s3297_s16, 2048  ;;  %s2903_s9 = scalar_lea.hbm %s3355_s6, 4096 }
 0x364   : > { %p2900_p1 = scmp.ne.s32.totalorder %s3297_s16, %s2899_s1  ;;  %p2904_p12 = scmp.lt.s32.totalorder %s3297_s16, %s3355_s6 }
 0x365   : > { %p2905_p5 = scmp.lt.s32.totalorder %s2903_s9, %s2899_s1 }
 0x366   : > { %p2901_p4 = pnand %p2900_p1, %p3121_p0 }
 0x367   : > { %p2906_p3 = por %p2905_p5, %p2904_p12 }
 0x368   : > { %p2902_p8 = pneg %p2901_p4 }
 0x36a   : > { %p2907_p10 = pnand %p2906_p3, %p2902_p8 }
 0x36c   : > { %2910 = shalt.err (!%p2907_p10)
}
 0x36d   : > { %s2984_s17 = smov 64   ;;  %s2985_s14 = smov 4  }
 0x36e   : > { %2646 = dma.vmem_to_hbm [thread:$0]  (%p3121_p0), %s3299_s28, 2048, %s3297_s16, %s1902_s10, %s2984_s17, %s2984_s17, %s2985_s14  }
 0x36f PF: > { %s1930_s18 = sand.u32 1, %s2953_s21   ;;  %p3375_p2 = scmp.ne.s32.totalorder %s3365_s8, 0 }
 0x370   : > { %p3376_p11 = scmp.ge.s32.totalorder %s2973_s26, 2  ;;  %s1931_s13 = scalar_lea.sflag [#allocation5], %s1930_s18 }
 0x372   : > { %p2663_p7 = pnand %p3376_p11, %p3375_p2 }
 0x374   : > { %p2664_p6 = pneg %p2663_p7 }
 0x376   : > { %2948 = dma.done.wait (%p2664_p6), %s1931_s13, 2048  }
 0x377   : > { %2950 = vsyncadd (%p2664_p6), %s1931_s13, 4294965248  ;;  %s24_s26 = sadd.s32 1, %s2973_s26   ;;  %s3377_s21 = smov %s2957_s22 }
 0x378   : > { %p21_p9 = scmp.ge.s32.totalorder %s24_s26, 4   ;;  %s3378_s22 = smov %s2961_s23 }
 0x379   : > { %s3379_s23 = smov %s3133_s19  ;;  %s3380_s24 = smov %s2969_s25 }
 0x37a   : > { %s3381_s25 = smov %s3383_s20  ;;  %23 = sbr.rel (!%p21_p9) target bundleno = 11 (0xb), region = 110 }
 0x37f   :  { %1936 = vsyncpa [#allocation4], 1 }
 0x380   :  { %1938 = vsyncpa [#allocation4 + $0x1], 1 }
 0x381   :  { %1939 = vsyncpa [#allocation7], 1 }
 0x382   :  { %1940 = vsyncpa [#allocation10], 1 }
 0x383   :  { %1941 = vsyncpa [#allocation5], 1 }
 0x384   :  { %1943 = vsyncpa [#allocation5 + $0x1], 1 }

</bundles_post_ra>
